<compile_context>
chip_gen: v7x
topology: tpu7x:2x2x1
jax: 0.10.0
libtpu: 0.0.40
codegen_flags: <defaults>
</compile_context>

<pallas_src>
import functools

import jax
import jax.numpy as jnp
from jax import lax
from jax.experimental import pallas as pl
from jax.experimental.pallas import tpu as pltpu


# ----------------------------------------------------------------------------
# Kernel A: temporal conv as K accumulated MXU dots (+ bias), with per-sample
#           per-channel sum / sum-of-squares of the pre-bias output
#           accumulated across the T tiles.
# ----------------------------------------------------------------------------
def _conv_stats_kernel(x_ref, w_ref, b_ref, y_ref, sum_ref, sq_ref, *, v_pad):
    # x_ref  : ((T + 2*pad) * V_pad, C_in)  one zero-padded sample, resident
    # w_ref  : (K, C_in, C_out)             conv weights (tap, in, out)
    # b_ref  : (1, C_out)                   conv bias
    # y_ref  : (TT * V_pad, C_out)          conv output tile (f32)
    # sum_ref: (1, C_out)                   per-sample running pre-bias sum
    # sq_ref : (1, C_out)                   per-sample running pre-bias sum-sq
    K = w_ref.shape[0]
    rows = y_ref.shape[0]                   # TT * V_pad rows per tile
    t = pl.program_id(1)

    @pl.when(t == 0)
    def _init():
        sum_ref[...] = jnp.zeros_like(sum_ref)
        sq_ref[...] = jnp.zeros_like(sq_ref)

    # Output frames [t*TT, t*TT+TT) ; tap k reads padded frames shifted by k.
    row0 = t * rows
    acc = None
    for k in range(K):                      # static unrolled: K MXU dots
        start = pl.multiple_of(row0 + k * v_pad, v_pad)   # V_pad is a mult of 8
        xk = x_ref[pl.ds(start, rows), :]                 # (rows, C_in)
        d = jnp.dot(xk, w_ref[k], preferred_element_type=jnp.float32)
        acc = d if acc is None else acc + d               # f32 accumulator

    # Shifted (pre-bias) batch statistics: Var(y) == Var(acc), E[y] = E[acc]+b.
    sum_ref[...] += jnp.sum(acc, axis=0, keepdims=True)
    sq_ref[...] += jnp.sum(acc * acc, axis=0, keepdims=True)
    y_ref[...] = (acc + b_ref[0, :]).astype(y_ref.dtype)


# ----------------------------------------------------------------------------
# Kernel B: apply batch-norm affine transform  out = y * scale + shift
#           (pure HBM-bandwidth bound: large lane-dense row tiles)
# ----------------------------------------------------------------------------
def _bn_apply_kernel(y_ref, scale_ref, shift_ref, o_ref):
    o_ref[...] = y_ref[...] * scale_ref[0, :] + shift_ref[0, :]


def _largest_divisor_tile(total, cap, multiple=1):
    """Largest d <= cap with total % d == 0 and d % multiple == 0."""
    cap = max(multiple, min(cap, total))
    for d in range(cap, 0, -1):
        if total % d == 0 and d % multiple == 0:
            return d
    return total


# ----------------------------------------------------------------------------
# Wrapper
# ----------------------------------------------------------------------------
@functools.partial(
    jax.jit,
    static_argnames=("kernel_size", "stride", "t_tile_cap", "mxu_dtype"))
def unit_tcn_forward(x_nchw, w_kio, bias, gamma, beta, *,
                     kernel_size=9, stride=1, eps=1e-5,
                     t_tile_cap=128, mxu_dtype=jnp.bfloat16):
    # TODO(synk): strided temporal conv not implemented (module default stride=1).
    assert stride == 1
    # Even K would give T_out = T - 1 with PyTorch's pad=(K-1)//2.
    assert kernel_size % 2 == 1, "unit_tcn kernel expects odd kernel_size"
    N, C_in, T, V = x_nchw.shape
    K, _, C_out = w_kio.shape
    assert K == kernel_size
    pad = (kernel_size - 1) // 2
    T_out = T                               # stride 1, "same" temporal padding
    V_pad = -(-V // 8) * 8                  # sublane-align the joint axis

    # TODO(synk): ragged last T tile (cdiv grid + masking) for prime-ish T.
    TT = _largest_divisor_tile(T_out, t_tile_cap)
    n_t = T_out // TT
    rows_per_tile = TT * V_pad

    # --- boundary layout glue: ONE fused XLA pass over x ---------------------
    # NCHW -> NTVC, zero-pad T by `pad` each side and V up to V_pad, flatten
    # (T, V_pad) into a single row axis, cast to the MXU input dtype.
    x = jnp.transpose(x_nchw, (0, 2, 3, 1))                          # (N,T,V,Ci)
    x = jnp.pad(x, ((0, 0), (pad, pad), (0, V_pad - V), (0, 0)))
    x = x.reshape(N, (T + 2 * pad) * V_pad, C_in).astype(mxu_dtype)
    w = w_kio.astype(mxu_dtype)                                      # (K,Ci,Co)
    b2d = bias.reshape(1, C_out).astype(jnp.float32)

    conv_kernel = functools.partial(_conv_stats_kernel, v_pad=V_pad)

    y, ysum, ysq = pl.pallas_call(
        conv_kernel,
        out_shape=(
            jax.ShapeDtypeStruct((N, T_out * V_pad, C_out), jnp.float32),
            jax.ShapeDtypeStruct((N, 1, C_out), jnp.float32),
            jax.ShapeDtypeStruct((N, 1, C_out), jnp.float32),
        ),
        grid_spec=pltpu.PrefetchScalarGridSpec(
            num_scalar_prefetch=0,
            grid=(N, n_t),
            in_specs=[
                # Full padded sample: constant block index across t -> resident.
                pl.BlockSpec((None, (T + 2 * pad) * V_pad, C_in),
                             lambda n, t: (n, 0, 0)),
                pl.BlockSpec((K, C_in, C_out), lambda n, t: (0, 0, 0)),
                pl.BlockSpec((1, C_out), lambda n, t: (0, 0)),
            ],
            out_specs=[
                pl.BlockSpec((None, rows_per_tile, C_out),
                             lambda n, t: (n, t, 0)),
                pl.BlockSpec((None, 1, C_out), lambda n, t: (n, 0, 0)),
                pl.BlockSpec((None, 1, C_out), lambda n, t: (n, 0, 0)),
            ],
        ),
        compiler_params=pltpu.CompilerParams(
            # N parallel (per-sample stats outputs); T is the stats-accumulation
            # axis. 48 MiB scoped VMEM: above the 16/32 MiB defaults, below
            # v7x's 64 MiB physical capacity.
            dimension_semantics=("parallel", "arbitrary"),
            vmem_limit_bytes=48 * 1024 * 1024),
    )(x, w, b2d)

    # BatchNorm2d training-mode statistics (tiny per-channel f32 glue).
    count = jnp.float32(N * T_out * V)            # real (unpadded) joints only
    mean_pre = jnp.sum(ysum, axis=(0, 1)) / count # E[conv(x)] (pre-bias)
    var = jnp.sum(ysq, axis=(0, 1)) / count - mean_pre * mean_pre
    mean = mean_pre + bias.astype(jnp.float32)
    inv_std = lax.rsqrt(var + eps)
    scale = gamma.astype(jnp.float32) * inv_std
    shift = beta.astype(jnp.float32) - mean * scale

    # --- BN apply: flatten to (N*T*V_pad, C_out), big lane-dense row tiles ---
    total_rows = N * T_out * V_pad
    RT = _largest_divisor_tile(total_rows, 2048, multiple=8)
    y2d = y.reshape(total_rows, C_out)

    out2d = pl.pallas_call(
        _bn_apply_kernel,
        out_shape=jax.ShapeDtypeStruct((total_rows, C_out), jnp.float32),
        grid_spec=pltpu.PrefetchScalarGridSpec(
            num_scalar_prefetch=0,
            grid=(total_rows // RT,),
            in_specs=[
                pl.BlockSpec((RT, C_out), lambda r: (r, 0)),
                pl.BlockSpec((1, C_out), lambda r: (0, 0)),
                pl.BlockSpec((1, C_out), lambda r: (0, 0)),
            ],
            out_specs=pl.BlockSpec((RT, C_out), lambda r: (r, 0)),
        ),
        input_output_aliases={0: 0},          # write BN result in place over y
        compiler_params=pltpu.CompilerParams(
            dimension_semantics=("parallel",),
            vmem_limit_bytes=48 * 1024 * 1024),
    )(y2d, scale.reshape(1, C_out), shift.reshape(1, C_out))

    # Back to NCHW at the module boundary only (drop V padding).
    out = out2d.reshape(N, T_out, V_pad, C_out)[:, :, :V, :]
    return jnp.transpose(out, (0, 3, 1, 2))


# ----------------------------------------------------------------------------
# Pure-JAX reference (correctness sanity check)
# ----------------------------------------------------------------------------
def _reference(x_nchw, w_kio, bias, gamma, beta, kernel_size=9, eps=1e-5):
    pad = (kernel_size - 1) // 2
    # (K, C_in, C_out) -> OIHW (C_out, C_in, K, 1)
    w_oihw = jnp.transpose(w_kio, (2, 1, 0))[..., None]
    y = lax.conv_general_dilated(
        x_nchw.astype(jnp.float32), w_oihw,
        window_strides=(1, 1), padding=((pad, pad), (0, 0)),
        dimension_numbers=("NCHW", "OIHW", "NCHW"))
    y = y + bias[None, :, None, None]
    mean = jnp.mean(y, axis=(0, 2, 3), keepdims=True)
    var = jnp.mean((y - mean) ** 2, axis=(0, 2, 3), keepdims=True)
    yn = (y - mean) * lax.rsqrt(var + eps)
    return yn * gamma[None, :, None, None] + beta[None, :, None, None]


if __name__ == "__main__":
    def _run_case(N, C_in, C_out, T, V, K, t_tile_cap, random_affine,
                  mxu_dtype, tol, seed):
        key = jax.random.fold_in(jax.random.PRNGKey(0), seed)
        kx, kw, kb, kg, ke = jax.random.split(key, 5)
        x = jax.random.normal(kx, (N, C_in, T, V), dtype=jnp.float32)
        # conv_init: kaiming_normal_(mode='fan_out'): std = sqrt(2/(C_out*K*1))
        std = (2.0 / (C_out * K * 1)) ** 0.5
        w = jax.random.normal(kw, (K, C_in, C_out), dtype=jnp.float32) * std
        if random_affine:
            b = 0.1 * jax.random.normal(kb, (C_out,), jnp.float32)
            gamma = 1.0 + 0.1 * jax.random.normal(kg, (C_out,), jnp.float32)
            beta = 0.1 * jax.random.normal(ke, (C_out,), jnp.float32)
        else:
            b = jnp.zeros((C_out,), jnp.float32)      # conv bias -> 0
            gamma = jnp.ones((C_out,), jnp.float32)   # bn weight -> 1
            beta = jnp.zeros((C_out,), jnp.float32)   # bn bias   -> 0

        out = unit_tcn_forward(x, w, b, gamma, beta, kernel_size=K, stride=1,
                               t_tile_cap=t_tile_cap, mxu_dtype=mxu_dtype)
        out = jax.block_until_ready(out)

        ref = _reference(x, w, b, gamma, beta, kernel_size=K)
        assert out.shape == (N, C_out, T, V), out.shape
        err = float(jnp.max(jnp.abs(out - ref)))
        assert err < tol, (err, tol)

    # Case 1: module-default init (bias=0, gamma=1, beta=0), single T tile,
    #         bf16 MXU inputs (default fast path) -> loose tolerance.
    _run_case(N=2, C_in=4, C_out=8, T=16, V=16, K=9, t_tile_cap=128,
              random_affine=False, mxu_dtype=jnp.bfloat16, tol=5e-2, seed=0)
    # Case 2: V=25 (exercises V->32 padding), multi-tile T axis (3 tiles of 16,
    #         halo across tile boundaries), nonzero conv bias + BN affine,
    #         f32 MXU inputs -> tight tolerance pins exact semantics.
    _run_case(N=2, C_in=8, C_out=32, T=48, V=25, K=9, t_tile_cap=16,
              random_affine=True, mxu_dtype=jnp.float32, tol=5e-4, seed=1)

    print("KERNEL_OK")
</pallas_src>

<mosaic_0001>
module attributes {stable_mosaic.version = 11 : i64} {
  func.func @_conv_stats_kernel(%arg0: i32, %arg1: i32, %arg2: memref<1x384x4xbf16, #tpu.memory_space<vmem>>, %arg3: memref<9x4x8xbf16, #tpu.memory_space<vmem>>, %arg4: memref<1x8xf32, #tpu.memory_space<vmem>>, %arg5: memref<1x256x8xf32, #tpu.memory_space<vmem>>, %arg6: memref<1x1x8xf32, #tpu.memory_space<vmem>>, %arg7: memref<1x1x8xf32, #tpu.memory_space<vmem>>) attributes {dimension_semantics = [#tpu.dimension_semantics<parallel>, #tpu.dimension_semantics<arbitrary>], iteration_bounds = array<i64: 2, 1>, scalar_prefetch = 0 : i64, scratch_operands = 0 : i64, tpu.core_type = #tpu.core_type<tc>, window_params = [{transform_indices = @transform_0, window_bounds = array<i64: 1, 384, 4>}, {pipeline_mode = #tpu.pipeline_mode<synchronous>, transform_indices = @transform_1, window_bounds = array<i64: 9, 4, 8>}, {pipeline_mode = #tpu.pipeline_mode<synchronous>, transform_indices = @transform_2, window_bounds = array<i64: 1, 8>}, {transform_indices = @transform_3, window_bounds = array<i64: 1, 256, 8>}, {transform_indices = @transform_4, window_bounds = array<i64: 1, 1, 8>}, {transform_indices = @transform_5, window_bounds = array<i64: 1, 1, 8>}]} {
    %c0_i32 = arith.constant 0 : i32
    %0 = arith.cmpi eq, %arg1, %c0_i32 : i32
    %1 = arith.extui %0 : i1 to i32
    %c0_i32_0 = arith.constant 0 : i32
    %2 = arith.cmpi ne, %1, %c0_i32_0 : i32
    scf.if %2 {
      %cst_65 = arith.constant 0.000000e+00 : f32
      %109 = vector.broadcast %cst_65 : f32 to vector<1x8xf32>
      %c0_66 = arith.constant 0 : index
      %c0_67 = arith.constant 0 : index
      %c0_68 = arith.constant 0 : index
      %110 = vector.load %arg6[%c0_66, %c0_67, %c0_68] : memref<1x1x8xf32, #tpu.memory_space<vmem>>, vector<1x1x8xf32>
      %111 = vector.shape_cast %110 : vector<1x1x8xf32> to vector<1x8xf32>
      %112 = vector.shape_cast %109 : vector<1x8xf32> to vector<1x1x8xf32>
      tpu.vector_store %arg6[%c0_66, %c0_67, %c0_68], %112 {strides = array<i32>} : memref<1x1x8xf32, #tpu.memory_space<vmem>>, vector<1x1x8xf32>,
      %cst_69 = arith.constant 0.000000e+00 : f32
      %113 = vector.broadcast %cst_69 : f32 to vector<1x8xf32>
      %c0_70 = arith.constant 0 : index
      %c0_71 = arith.constant 0 : index
      %c0_72 = arith.constant 0 : index
      %114 = vector.load %arg7[%c0_70, %c0_71, %c0_72] : memref<1x1x8xf32, #tpu.memory_space<vmem>>, vector<1x1x8xf32>
      %115 = vector.shape_cast %114 : vector<1x1x8xf32> to vector<1x8xf32>
      %116 = vector.shape_cast %113 : vector<1x8xf32> to vector<1x1x8xf32>
      tpu.vector_store %arg7[%c0_70, %c0_71, %c0_72], %116 {strides = array<i32>} : memref<1x1x8xf32, #tpu.memory_space<vmem>>, vector<1x1x8xf32>,
    } else {
    }
    %c256_i32 = arith.constant 256 : i32
    %3 = arith.muli %arg1, %c256_i32 : i32
    %c0_i32_1 = arith.constant 0 : i32
    %4 = arith.addi %3, %c0_i32_1 : i32
    %5 = tpu.assume_multiple %4, 16 : i32
    %c0 = arith.constant 0 : index
    %6 = arith.index_cast %5 : i32 to index
    %c0_2 = arith.constant 0 : index
    %7 = vector.load %arg2[%c0, %6, %c0_2] : memref<1x384x4xbf16, #tpu.memory_space<vmem>>, vector<1x256x4xbf16>
    %8 = vector.shape_cast %7 : vector<1x256x4xbf16> to vector<256x4xbf16>
    %c0_3 = arith.constant 0 : index
    %c0_4 = arith.constant 0 : index
    %c0_5 = arith.constant 0 : index
    %9 = vector.load %arg3[%c0_3, %c0_4, %c0_5] : memref<9x4x8xbf16, #tpu.memory_space<vmem>>, vector<1x4x8xbf16>
    %10 = vector.shape_cast %9 : vector<1x4x8xbf16> to vector<4x8xbf16>
    %cst = arith.constant dense<0.000000e+00> : vector<256x8xf32>
    %11 = tpu.matmul %8, %10, %cst {dimension_numbers = #tpu.dot_dimension_numbers<[1], [0], [0], [1], [0, 0, 1, 1], [], []>} : vector<256x4xbf16>, vector<4x8xbf16>, vector<256x8xf32> -> vector<256x8xf32>
    %c16_i32 = arith.constant 16 : i32
    %12 = arith.addi %3, %c16_i32 : i32
    %13 = tpu.assume_multiple %12, 16 : i32
    %c0_6 = arith.constant 0 : index
    %14 = arith.index_cast %13 : i32 to index
    %c0_7 = arith.constant 0 : index
    %15 = vector.load %arg2[%c0_6, %14, %c0_7] : memref<1x384x4xbf16, #tpu.memory_space<vmem>>, vector<1x256x4xbf16>
    %16 = vector.shape_cast %15 : vector<1x256x4xbf16> to vector<256x4xbf16>
    %c1 = arith.constant 1 : index
    %c0_8 = arith.constant 0 : index
    %c0_9 = arith.constant 0 : index
    %17 = vector.load %arg3[%c1, %c0_8, %c0_9] : memref<9x4x8xbf16, #tpu.memory_space<vmem>>, vector<1x4x8xbf16>
    %18 = vector.shape_cast %17 : vector<1x4x8xbf16> to vector<4x8xbf16>
    %cst_10 = arith.constant dense<0.000000e+00> : vector<256x8xf32>
    %19 = tpu.matmul %16, %18, %cst_10 {dimension_numbers = #tpu.dot_dimension_numbers<[1], [0], [0], [1], [0, 0, 1, 1], [], []>} : vector<256x4xbf16>, vector<4x8xbf16>, vector<256x8xf32> -> vector<256x8xf32>
    %20 = arith.addf %11, %19 : vector<256x8xf32>
    %c32_i32 = arith.constant 32 : i32
    %21 = arith.addi %3, %c32_i32 : i32
    %22 = tpu.assume_multiple %21, 16 : i32
    %c0_11 = arith.constant 0 : index
    %23 = arith.index_cast %22 : i32 to index
    %c0_12 = arith.constant 0 : index
    %24 = vector.load %arg2[%c0_11, %23, %c0_12] : memref<1x384x4xbf16, #tpu.memory_space<vmem>>, vector<1x256x4xbf16>
    %25 = vector.shape_cast %24 : vector<1x256x4xbf16> to vector<256x4xbf16>
    %c2 = arith.constant 2 : index
    %c0_13 = arith.constant 0 : index
    %c0_14 = arith.constant 0 : index
    %26 = vector.load %arg3[%c2, %c0_13, %c0_14] : memref<9x4x8xbf16, #tpu.memory_space<vmem>>, vector<1x4x8xbf16>
    %27 = vector.shape_cast %26 : vector<1x4x8xbf16> to vector<4x8xbf16>
    %cst_15 = arith.constant dense<0.000000e+00> : vector<256x8xf32>
    %28 = tpu.matmul %25, %27, %cst_15 {dimension_numbers = #tpu.dot_dimension_numbers<[1], [0], [0], [1], [0, 0, 1, 1], [], []>} : vector<256x4xbf16>, vector<4x8xbf16>, vector<256x8xf32> -> vector<256x8xf32>
    %29 = arith.addf %20, %28 : vector<256x8xf32>
    %c48_i32 = arith.constant 48 : i32
    %30 = arith.addi %3, %c48_i32 : i32
    %31 = tpu.assume_multiple %30, 16 : i32
    %c0_16 = arith.constant 0 : index
    %32 = arith.index_cast %31 : i32 to index
    %c0_17 = arith.constant 0 : index
    %33 = vector.load %arg2[%c0_16, %32, %c0_17] : memref<1x384x4xbf16, #tpu.memory_space<vmem>>, vector<1x256x4xbf16>
    %34 = vector.shape_cast %33 : vector<1x256x4xbf16> to vector<256x4xbf16>
    %c3 = arith.constant 3 : index
    %c0_18 = arith.constant 0 : index
    %c0_19 = arith.constant 0 : index
    %35 = vector.load %arg3[%c3, %c0_18, %c0_19] : memref<9x4x8xbf16, #tpu.memory_space<vmem>>, vector<1x4x8xbf16>
    %36 = vector.shape_cast %35 : vector<1x4x8xbf16> to vector<4x8xbf16>
    %cst_20 = arith.constant dense<0.000000e+00> : vector<256x8xf32>
    %37 = tpu.matmul %34, %36, %cst_20 {dimension_numbers = #tpu.dot_dimension_numbers<[1], [0], [0], [1], [0, 0, 1, 1], [], []>} : vector<256x4xbf16>, vector<4x8xbf16>, vector<256x8xf32> -> vector<256x8xf32>
    %38 = arith.addf %29, %37 : vector<256x8xf32>
    %c64_i32 = arith.constant 64 : i32
    %39 = arith.addi %3, %c64_i32 : i32
    %40 = tpu.assume_multiple %39, 16 : i32
    %c0_21 = arith.constant 0 : index
    %41 = arith.index_cast %40 : i32 to index
    %c0_22 = arith.constant 0 : index
    %42 = vector.load %arg2[%c0_21, %41, %c0_22] : memref<1x384x4xbf16, #tpu.memory_space<vmem>>, vector<1x256x4xbf16>
    %43 = vector.shape_cast %42 : vector<1x256x4xbf16> to vector<256x4xbf16>
    %c4 = arith.constant 4 : index
    %c0_23 = arith.constant 0 : index
    %c0_24 = arith.constant 0 : index
    %44 = vector.load %arg3[%c4, %c0_23, %c0_24] : memref<9x4x8xbf16, #tpu.memory_space<vmem>>, vector<1x4x8xbf16>
    %45 = vector.shape_cast %44 : vector<1x4x8xbf16> to vector<4x8xbf16>
    %cst_25 = arith.constant dense<0.000000e+00> : vector<256x8xf32>
    %46 = tpu.matmul %43, %45, %cst_25 {dimension_numbers = #tpu.dot_dimension_numbers<[1], [0], [0], [1], [0, 0, 1, 1], [], []>} : vector<256x4xbf16>, vector<4x8xbf16>, vector<256x8xf32> -> vector<256x8xf32>
    %47 = arith.addf %38, %46 : vector<256x8xf32>
    %c80_i32 = arith.constant 80 : i32
    %48 = arith.addi %3, %c80_i32 : i32
    %49 = tpu.assume_multiple %48, 16 : i32
    %c0_26 = arith.constant 0 : index
    %50 = arith.index_cast %49 : i32 to index
    %c0_27 = arith.constant 0 : index
    %51 = vector.load %arg2[%c0_26, %50, %c0_27] : memref<1x384x4xbf16, #tpu.memory_space<vmem>>, vector<1x256x4xbf16>
    %52 = vector.shape_cast %51 : vector<1x256x4xbf16> to vector<256x4xbf16>
    %c5 = arith.constant 5 : index
    %c0_28 = arith.constant 0 : index
    %c0_29 = arith.constant 0 : index
    %53 = vector.load %arg3[%c5, %c0_28, %c0_29] : memref<9x4x8xbf16, #tpu.memory_space<vmem>>, vector<1x4x8xbf16>
    %54 = vector.shape_cast %53 : vector<1x4x8xbf16> to vector<4x8xbf16>
    %cst_30 = arith.constant dense<0.000000e+00> : vector<256x8xf32>
    %55 = tpu.matmul %52, %54, %cst_30 {dimension_numbers = #tpu.dot_dimension_numbers<[1], [0], [0], [1], [0, 0, 1, 1], [], []>} : vector<256x4xbf16>, vector<4x8xbf16>, vector<256x8xf32> -> vector<256x8xf32>
    %56 = arith.addf %47, %55 : vector<256x8xf32>
    %c96_i32 = arith.constant 96 : i32
    %57 = arith.addi %3, %c96_i32 : i32
    %58 = tpu.assume_multiple %57, 16 : i32
    %c0_31 = arith.constant 0 : index
    %59 = arith.index_cast %58 : i32 to index
    %c0_32 = arith.constant 0 : index
    %60 = vector.load %arg2[%c0_31, %59, %c0_32] : memref<1x384x4xbf16, #tpu.memory_space<vmem>>, vector<1x256x4xbf16>
    %61 = vector.shape_cast %60 : vector<1x256x4xbf16> to vector<256x4xbf16>
    %c6 = arith.constant 6 : index
    %c0_33 = arith.constant 0 : index
    %c0_34 = arith.constant 0 : index
    %62 = vector.load %arg3[%c6, %c0_33, %c0_34] : memref<9x4x8xbf16, #tpu.memory_space<vmem>>, vector<1x4x8xbf16>
    %63 = vector.shape_cast %62 : vector<1x4x8xbf16> to vector<4x8xbf16>
    %cst_35 = arith.constant dense<0.000000e+00> : vector<256x8xf32>
    %64 = tpu.matmul %61, %63, %cst_35 {dimension_numbers = #tpu.dot_dimension_numbers<[1], [0], [0], [1], [0, 0, 1, 1], [], []>} : vector<256x4xbf16>, vector<4x8xbf16>, vector<256x8xf32> -> vector<256x8xf32>
    %65 = arith.addf %56, %64 : vector<256x8xf32>
    %c112_i32 = arith.constant 112 : i32
    %66 = arith.addi %3, %c112_i32 : i32
    %67 = tpu.assume_multiple %66, 16 : i32
    %c0_36 = arith.constant 0 : index
    %68 = arith.index_cast %67 : i32 to index
    %c0_37 = arith.constant 0 : index
    %69 = vector.load %arg2[%c0_36, %68, %c0_37] : memref<1x384x4xbf16, #tpu.memory_space<vmem>>, vector<1x256x4xbf16>
    %70 = vector.shape_cast %69 : vector<1x256x4xbf16> to vector<256x4xbf16>
    %c7 = arith.constant 7 : index
    %c0_38 = arith.constant 0 : index
    %c0_39 = arith.constant 0 : index
    %71 = vector.load %arg3[%c7, %c0_38, %c0_39] : memref<9x4x8xbf16, #tpu.memory_space<vmem>>, vector<1x4x8xbf16>
    %72 = vector.shape_cast %71 : vector<1x4x8xbf16> to vector<4x8xbf16>
    %cst_40 = arith.constant dense<0.000000e+00> : vector<256x8xf32>
    %73 = tpu.matmul %70, %72, %cst_40 {dimension_numbers = #tpu.dot_dimension_numbers<[1], [0], [0], [1], [0, 0, 1, 1], [], []>} : vector<256x4xbf16>, vector<4x8xbf16>, vector<256x8xf32> -> vector<256x8xf32>
    %74 = arith.addf %65, %73 : vector<256x8xf32>
    %c128_i32 = arith.constant 128 : i32
    %75 = arith.addi %3, %c128_i32 : i32
    %76 = tpu.assume_multiple %75, 16 : i32
    %c0_41 = arith.constant 0 : index
    %77 = arith.index_cast %76 : i32 to index
    %c0_42 = arith.constant 0 : index
    %78 = vector.load %arg2[%c0_41, %77, %c0_42] : memref<1x384x4xbf16, #tpu.memory_space<vmem>>, vector<1x256x4xbf16>
    %79 = vector.shape_cast %78 : vector<1x256x4xbf16> to vector<256x4xbf16>
    %c8 = arith.constant 8 : index
    %c0_43 = arith.constant 0 : index
    %c0_44 = arith.constant 0 : index
    %80 = vector.load %arg3[%c8, %c0_43, %c0_44] : memref<9x4x8xbf16, #tpu.memory_space<vmem>>, vector<1x4x8xbf16>
    %81 = vector.shape_cast %80 : vector<1x4x8xbf16> to vector<4x8xbf16>
    %cst_45 = arith.constant dense<0.000000e+00> : vector<256x8xf32>
    %82 = tpu.matmul %79, %81, %cst_45 {dimension_numbers = #tpu.dot_dimension_numbers<[1], [0], [0], [1], [0, 0, 1, 1], [], []>} : vector<256x4xbf16>, vector<4x8xbf16>, vector<256x8xf32> -> vector<256x8xf32>
    %83 = arith.addf %74, %82 : vector<256x8xf32>
    %c0_46 = arith.constant 0 : index
    %c0_47 = arith.constant 0 : index
    %c0_48 = arith.constant 0 : index
    %84 = vector.load %arg6[%c0_46, %c0_47, %c0_48] : memref<1x1x8xf32, #tpu.memory_space<vmem>>, vector<1x1x8xf32>
    %85 = vector.shape_cast %84 : vector<1x1x8xf32> to vector<1x8xf32>
    %cst_49 = arith.constant dense<0.000000e+00> : vector<8xf32>
    %86 = vector.multi_reduction <add>, %83, %cst_49 [0] : vector<256x8xf32> to vector<8xf32>
    %87 = vector.shape_cast %86 : vector<8xf32> to vector<1x8xf32>
    %88 = arith.addf %85, %87 : vector<1x8xf32>
    %c0_50 = arith.constant 0 : index
    %c0_51 = arith.constant 0 : index
    %c0_52 = arith.constant 0 : index
    %89 = vector.load %arg6[%c0_50, %c0_51, %c0_52] : memref<1x1x8xf32, #tpu.memory_space<vmem>>, vector<1x1x8xf32>
    %90 = vector.shape_cast %89 : vector<1x1x8xf32> to vector<1x8xf32>
    %91 = vector.shape_cast %88 : vector<1x8xf32> to vector<1x1x8xf32>
    tpu.vector_store %arg6[%c0_50, %c0_51, %c0_52], %91 {strides = array<i32>} : memref<1x1x8xf32, #tpu.memory_space<vmem>>, vector<1x1x8xf32>,
    %c0_53 = arith.constant 0 : index
    %c0_54 = arith.constant 0 : index
    %c0_55 = arith.constant 0 : index
    %92 = vector.load %arg7[%c0_53, %c0_54, %c0_55] : memref<1x1x8xf32, #tpu.memory_space<vmem>>, vector<1x1x8xf32>
    %93 = vector.shape_cast %92 : vector<1x1x8xf32> to vector<1x8xf32>
    %94 = arith.mulf %83, %83 : vector<256x8xf32>
    %cst_56 = arith.constant dense<0.000000e+00> : vector<8xf32>
    %95 = vector.multi_reduction <add>, %94, %cst_56 [0] : vector<256x8xf32> to vector<8xf32>
    %96 = vector.shape_cast %95 : vector<8xf32> to vector<1x8xf32>
    %97 = arith.addf %93, %96 : vector<1x8xf32>
    %c0_57 = arith.constant 0 : index
    %c0_58 = arith.constant 0 : index
    %c0_59 = arith.constant 0 : index
    %98 = vector.load %arg7[%c0_57, %c0_58, %c0_59] : memref<1x1x8xf32, #tpu.memory_space<vmem>>, vector<1x1x8xf32>
    %99 = vector.shape_cast %98 : vector<1x1x8xf32> to vector<1x8xf32>
    %100 = vector.shape_cast %97 : vector<1x8xf32> to vector<1x1x8xf32>
    tpu.vector_store %arg7[%c0_57, %c0_58, %c0_59], %100 {strides = array<i32>} : memref<1x1x8xf32, #tpu.memory_space<vmem>>, vector<1x1x8xf32>,
    %c0_60 = arith.constant 0 : index
    %c0_61 = arith.constant 0 : index
    %101 = vector.load %arg4[%c0_60, %c0_61] : memref<1x8xf32, #tpu.memory_space<vmem>>, vector<1x8xf32>
    %102 = vector.shape_cast %101 : vector<1x8xf32> to vector<8xf32>
    %103 = vector.shape_cast %102 : vector<8xf32> to vector<1x8xf32>
    %104 = vector.broadcast %103 : vector<1x8xf32> to vector<256x8xf32>
    %105 = arith.addf %83, %104 : vector<256x8xf32>
    %c0_62 = arith.constant 0 : index
    %c0_63 = arith.constant 0 : index
    %c0_64 = arith.constant 0 : index
    %106 = vector.load %arg5[%c0_62, %c0_63, %c0_64] : memref<1x256x8xf32, #tpu.memory_space<vmem>>, vector<1x256x8xf32>
    %107 = vector.shape_cast %106 : vector<1x256x8xf32> to vector<256x8xf32>
    %108 = vector.shape_cast %105 : vector<256x8xf32> to vector<1x256x8xf32>
    tpu.vector_store %arg5[%c0_62, %c0_63, %c0_64], %108 {strides = array<i32>} : memref<1x256x8xf32, #tpu.memory_space<vmem>>, vector<1x256x8xf32>,
    return
  }
  func.func @transform_0(%arg0: i32, %arg1: i32) -> (i32, i32, i32) {
    %c0_i32 = arith.constant 0 : i32
    %c0_i32_0 = arith.constant 0 : i32
    %c0_i32_1 = arith.constant 0 : i32
    return %arg0, %c0_i32, %c0_i32_0 : i32, i32, i32
  }
  func.func @transform_1(%arg0: i32, %arg1: i32) -> (i32, i32, i32) {
    %c0_i32 = arith.constant 0 : i32
    %c0_i32_0 = arith.constant 0 : i32
    %c0_i32_1 = arith.constant 0 : i32
    %c0_i32_2 = arith.constant 0 : i32
    return %c0_i32, %c0_i32_0, %c0_i32_1 : i32, i32, i32
  }
  func.func @transform_2(%arg0: i32, %arg1: i32) -> (i32, i32) {
    %c0_i32 = arith.constant 0 : i32
    %c0_i32_0 = arith.constant 0 : i32
    %c0_i32_1 = arith.constant 0 : i32
    return %c0_i32, %c0_i32_0 : i32, i32
  }
  func.func @transform_3(%arg0: i32, %arg1: i32) -> (i32, i32, i32) {
    %c0_i32 = arith.constant 0 : i32
    %c0_i32_0 = arith.constant 0 : i32
    return %arg0, %arg1, %c0_i32 : i32, i32, i32
  }
  func.func @transform_4(%arg0: i32, %arg1: i32) -> (i32, i32, i32) {
    %c0_i32 = arith.constant 0 : i32
    %c0_i32_0 = arith.constant 0 : i32
    %c0_i32_1 = arith.constant 0 : i32
    return %arg0, %c0_i32, %c0_i32_0 : i32, i32, i32
  }
  func.func @transform_5(%arg0: i32, %arg1: i32) -> (i32, i32, i32) {
    %c0_i32 = arith.constant 0 : i32
    %c0_i32_0 = arith.constant 0 : i32
    %c0_i32_1 = arith.constant 0 : i32
    return %arg0, %c0_i32, %c0_i32_0 : i32, i32, i32
  }
}

module attributes {stable_mosaic.version = 11 : i64} {
  func.func @_bn_apply_kernel(%arg0: i32, %arg1: memref<512x8xf32, #tpu.memory_space<vmem>>, %arg2: memref<1x8xf32, #tpu.memory_space<vmem>>, %arg3: memref<1x8xf32, #tpu.memory_space<vmem>>, %arg4: memref<512x8xf32, #tpu.memory_space<vmem>>) attributes {dimension_semantics = [#tpu.dimension_semantics<parallel>], iteration_bounds = array<i64: 1>, scalar_prefetch = 0 : i64, scratch_operands = 0 : i64, tpu.core_type = #tpu.core_type<tc>, window_params = [{transform_indices = @transform_0, window_bounds = array<i64: 512, 8>}, {pipeline_mode = #tpu.pipeline_mode<synchronous>, transform_indices = @transform_1, window_bounds = array<i64: 1, 8>}, {pipeline_mode = #tpu.pipeline_mode<synchronous>, transform_indices = @transform_2, window_bounds = array<i64: 1, 8>}, {transform_indices = @transform_3, window_bounds = array<i64: 512, 8>}]} {
    %c0 = arith.constant 0 : index
    %c0_0 = arith.constant 0 : index
    %0 = vector.load %arg1[%c0, %c0_0] : memref<512x8xf32, #tpu.memory_space<vmem>>, vector<512x8xf32>
    %c0_1 = arith.constant 0 : index
    %c0_2 = arith.constant 0 : index
    %1 = vector.load %arg2[%c0_1, %c0_2] : memref<1x8xf32, #tpu.memory_space<vmem>>, vector<1x8xf32>
    %2 = vector.shape_cast %1 : vector<1x8xf32> to vector<8xf32>
    %3 = vector.shape_cast %2 : vector<8xf32> to vector<1x8xf32>
    %4 = vector.broadcast %3 : vector<1x8xf32> to vector<512x8xf32>
    %5 = arith.mulf %0, %4 : vector<512x8xf32>
    %c0_3 = arith.constant 0 : index
    %c0_4 = arith.constant 0 : index
    %6 = vector.load %arg3[%c0_3, %c0_4] : memref<1x8xf32, #tpu.memory_space<vmem>>, vector<1x8xf32>
    %7 = vector.shape_cast %6 : vector<1x8xf32> to vector<8xf32>
    %8 = vector.shape_cast %7 : vector<8xf32> to vector<1x8xf32>
    %9 = vector.broadcast %8 : vector<1x8xf32> to vector<512x8xf32>
    %10 = arith.addf %5, %9 : vector<512x8xf32>
    %c0_5 = arith.constant 0 : index
    %c0_6 = arith.constant 0 : index
    %11 = vector.load %arg4[%c0_5, %c0_6] : memref<512x8xf32, #tpu.memory_space<vmem>>, vector<512x8xf32>
    tpu.vector_store %arg4[%c0_5, %c0_6], %10 {strides = array<i32>} : memref<512x8xf32, #tpu.memory_space<vmem>>, vector<512x8xf32>,
    return
  }
  func.func @transform_0(%arg0: i32) -> (i32, i32) {
    %c0_i32 = arith.constant 0 : i32
    %c0_i32_0 = arith.constant 0 : i32
    return %arg0, %c0_i32 : i32, i32
  }
  func.func @transform_1(%arg0: i32) -> (i32, i32) {
    %c0_i32 = arith.constant 0 : i32
    %c0_i32_0 = arith.constant 0 : i32
    %c0_i32_1 = arith.constant 0 : i32
    return %c0_i32, %c0_i32_0 : i32, i32
  }
  func.func @transform_2(%arg0: i32) -> (i32, i32) {
    %c0_i32 = arith.constant 0 : i32
    %c0_i32_0 = arith.constant 0 : i32
    %c0_i32_1 = arith.constant 0 : i32
    return %c0_i32, %c0_i32_0 : i32, i32
  }
  func.func @transform_3(%arg0: i32) -> (i32, i32) {
    %c0_i32 = arith.constant 0 : i32
    %c0_i32_0 = arith.constant 0 : i32
    return %arg0, %c0_i32 : i32, i32
  }
}

</mosaic_0001>

<bundles_post_ra>
// kernel: unit_tcn_forward.3
= control target key start
LH: loop header
LB: loop body
LE: loop exit
PB: predicated region body
PF: predicated region fallthrough
CT: control target
= control target key end

     0   :  { %vm220_vm0 = vcmask 64512   ;;  %s897_s0 = inlined_call_operand.vmem [shape: f32[512,8], index: 0, kind: input, shape index: {}, may-alias: {0,3}]   ;;  %s898_s1 = inlined_call_operand.vmem [shape: f32[1,8], index: 1, kind: input, shape index: {}]   ;;  %s899_s2 = inlined_call_operand.vmem [shape: f32[1,8], index: 2, kind: input, shape index: {}]   ;;  %s900_s3 = inlined_call_operand.vmem [shape: f32[512,8], index: 3, kind: output, shape index: {}, may-alias: {0,3}]  }
   0x1   :  { %v14_v0 = vld [vmem:[%s897_s0] sm:$0xff]  ;;  %v15_v4 = vld [vmem:[%s897_s0 + $0x8] sm:$0xff]  ;;  %v16_v5 = vld [vmem:[%s897_s0 + $0x10] sm:$0xff] }
   0x2   :  { %v317_v1 = vld [vmem:[%s898_s1] ss:$0 sm:$0xff]  ;;  %v17_v6 = vld [vmem:[%s897_s0 + $0x18] sm:$0xff]  ;;  %v19_v11 = vld [vmem:[%s897_s0 + $0x28] sm:$0xff] }
   0x3   :  { %v322_v2 = vld [vmem:[%s899_s2] ss:$0 sm:$0xff]  ;;  %v85_v3 = vmul.f32 %v317_v1, %v14_v0  ;;  %v86_v7 = vmul.f32 %v317_v1, %v15_v4  ;;  %v87_v8 = vmul.f32 %v317_v1, %v16_v5  ;;  %v88_v9 = vmul.f32 %v317_v1, %v17_v6  ;;  %v20_v12 = vld [vmem:[%s897_s0 + $0x30] sm:$0xff]  ;;  %v21_v17 = vld [vmem:[%s897_s0 + $0x38] sm:$0xff] }
   0x4   :  { %v18_v10 = vld [vmem:[%s897_s0 + $0x20] sm:$0xff]  ;;  %v90_v15 = vmul.f32 %v317_v1, %v19_v11  ;;  %v91_v16 = vmul.f32 %v317_v1, %v20_v12  ;;  %v23_v19 = vld [vmem:[%s897_s0 + $0x48] sm:$0xff]  ;;  %v92_v23 = vmul.f32 %v317_v1, %v21_v17  ;;  %v24_v24 = vld [vmem:[%s897_s0 + $0x50] sm:$0xff] }
   0x5   :  { %v156_v13 = vadd.f32 %v322_v2, %v85_v3  ;;  %v89_v14 = vmul.f32 %v317_v1, %v18_v10  ;;  %v22_v18 = vld [vmem:[%s897_s0 + $0x40] sm:$0xff]  ;;  %v157_v20 = vadd.f32 %v322_v2, %v86_v7  ;;  %v158_v21 = vadd.f32 %v322_v2, %v87_v8  ;;  %v25_v25 = vld [vmem:[%s897_s0 + $0x58] sm:$0xff] }
   0x6   :  { %v159_v22 = vadd.f32 %v322_v2, %v88_v9  ;;  %v26_v26 = vld [vmem:[%s897_s0 + $0x60] sm:$0xff]  ;;  %v161_v28 = vadd.f32 %v322_v2, %v90_v15  ;;  %v162_v29 = vadd.f32 %v322_v2, %v91_v16  ;;  %v93_v30 = vmul.f32 %v317_v1, %v22_v18 }
   0x7   :  { %221 = vst.msk [vmem:[%s900_s3] sm:$0xff] %vm220_vm0, %v156_v13  ;;  %v160_v27 = vadd.f32 %v322_v2, %v89_v14  ;;  %v163_v34 = vadd.f32 %v322_v2, %v92_v23  ;;  %v94_v35 = vmul.f32 %v317_v1, %v23_v19  ;;  %v95_v36 = vmul.f32 %v317_v1, %v24_v24 }
   0x8   :  { %v96_v37 = vmul.f32 %v317_v1, %v25_v25  ;;  %v164_v39 = vadd.f32 %v322_v2, %v93_v30  ;;  %v97_v40 = vmul.f32 %v317_v1, %v26_v26 }
   0x9   :  { %v165_v46 = vadd.f32 %v322_v2, %v94_v35  ;;  %v166_v47 = vadd.f32 %v322_v2, %v95_v36 }
   0xa   :  { %v167_v48 = vadd.f32 %v322_v2, %v96_v37  ;;  %v168_v53 = vadd.f32 %v322_v2, %v97_v40 }
   0xe   :  { %v27_v31 = vld [vmem:[%s897_s0 + $0x68] sm:$0xff]  ;;  %v28_v32 = vld [vmem:[%s897_s0 + $0x70] sm:$0xff]  ;;  %v29_v33 = vld [vmem:[%s897_s0 + $0x78] sm:$0xff] }
   0xf   :  { %222 = vst.msk [vmem:[%s900_s3 + $0x8] sm:$0xff] %vm220_vm0, %v157_v20  ;;  %223 = vst.msk [vmem:[%s900_s3 + $0x10] sm:$0xff] %vm220_vm0, %v158_v21  ;;  %v98_v41 = vmul.f32 %v317_v1, %v27_v31  ;;  %v99_v42 = vmul.f32 %v317_v1, %v28_v32  ;;  %v100_v49 = vmul.f32 %v317_v1, %v29_v33 }
  0x10   :  { %224 = vst.msk [vmem:[%s900_s3 + $0x18] sm:$0xff] %vm220_vm0, %v159_v22 }
  0x11   :  { %v169_v54 = vadd.f32 %v322_v2, %v98_v41  ;;  %v170_v55 = vadd.f32 %v322_v2, %v99_v42  ;;  %v171_v58 = vadd.f32 %v322_v2, %v100_v49 }
  0x17   :  { %v30_v38 = vld [vmem:[%s897_s0 + $0x80] sm:$0xff] }
  0x18   :  { %225 = vst.msk [vmem:[%s900_s3 + $0x20] sm:$0xff] %vm220_vm0, %v160_v27  ;;  %226 = vst.msk [vmem:[%s900_s3 + $0x28] sm:$0xff] %vm220_vm0, %v161_v28  ;;  %v101_v56 = vmul.f32 %v317_v1, %v30_v38 }
  0x19   :  { %227 = vst.msk [vmem:[%s900_s3 + $0x30] sm:$0xff] %vm220_vm0, %v162_v29 }
  0x1a   :  { %v172_v63 = vadd.f32 %v322_v2, %v101_v56 }
  0x20   :  { %v31_v43 = vld [vmem:[%s897_s0 + $0x88] sm:$0xff]  ;;  %v32_v44 = vld [vmem:[%s897_s0 + $0x90] sm:$0xff]  ;;  %v33_v45 = vld [vmem:[%s897_s0 + $0x98] sm:$0xff] }
  0x21   :  { %228 = vst.msk [vmem:[%s900_s3 + $0x38] sm:$0xff] %vm220_vm0, %v163_v34  ;;  %v102_v59 = vmul.f32 %v317_v1, %v31_v43  ;;  %v103_v60 = vmul.f32 %v317_v1, %v32_v44  ;;  %v104_v61 = vmul.f32 %v317_v1, %v33_v45 }
  0x23   :  { %v173_v8 = vadd.f32 %v322_v2, %v102_v59  ;;  %v174_v9 = vadd.f32 %v322_v2, %v103_v60  ;;  %v175_v10 = vadd.f32 %v322_v2, %v104_v61 }
  0x28   :  { %v34_v50 = vld [vmem:[%s897_s0 + $0xa0] sm:$0xff]  ;;  %v35_v51 = vld [vmem:[%s897_s0 + $0xa8] sm:$0xff]  ;;  %v36_v52 = vld [vmem:[%s897_s0 + $0xb0] sm:$0xff] }
  0x29   :  { %229 = vst.msk [vmem:[%s900_s3 + $0x40] sm:$0xff] %vm220_vm0, %v164_v39  ;;  %v105_v0 = vmul.f32 %v317_v1, %v34_v50  ;;  %v106_v3 = vmul.f32 %v317_v1, %v35_v51  ;;  %v107_v4 = vmul.f32 %v317_v1, %v36_v52 }
  0x2b   :  { %v176_v15 = vadd.f32 %v322_v2, %v105_v0  ;;  %v177_v16 = vadd.f32 %v322_v2, %v106_v3  ;;  %v178_v17 = vadd.f32 %v322_v2, %v107_v4 }
  0x30   :  { %v37_v57 = vld [vmem:[%s897_s0 + $0xb8] sm:$0xff] }
  0x31   :  { %230 = vst.msk [vmem:[%s900_s3 + $0x48] sm:$0xff] %vm220_vm0, %v165_v46  ;;  %231 = vst.msk [vmem:[%s900_s3 + $0x50] sm:$0xff] %vm220_vm0, %v166_v47  ;;  %v108_v11 = vmul.f32 %v317_v1, %v37_v57 }
  0x32   :  { %232 = vst.msk [vmem:[%s900_s3 + $0x58] sm:$0xff] %vm220_vm0, %v167_v48 }
  0x33   :  { %v179_v20 = vadd.f32 %v322_v2, %v108_v11 }
  0x39   :  { %v38_v62 = vld [vmem:[%s897_s0 + $0xc0] sm:$0xff] }
  0x3a   :  { %233 = vst.msk [vmem:[%s900_s3 + $0x60] sm:$0xff] %vm220_vm0, %v168_v53  ;;  %234 = vst.msk [vmem:[%s900_s3 + $0x68] sm:$0xff] %vm220_vm0, %v169_v54  ;;  %v109_v18 = vmul.f32 %v317_v1, %v38_v62 }
  0x3b   :  { %235 = vst.msk [vmem:[%s900_s3 + $0x70] sm:$0xff] %vm220_vm0, %v170_v55 }
  0x3c   :  { %v180_v25 = vadd.f32 %v322_v2, %v109_v18 }
  0x42   :  { %v39_v5 = vld [vmem:[%s897_s0 + $0xc8] sm:$0xff]  ;;  %v40_v6 = vld [vmem:[%s897_s0 + $0xd0] sm:$0xff]  ;;  %v41_v7 = vld [vmem:[%s897_s0 + $0xd8] sm:$0xff] }
  0x43   :  { %236 = vst.msk [vmem:[%s900_s3 + $0x78] sm:$0xff] %vm220_vm0, %v171_v58  ;;  %v110_v21 = vmul.f32 %v317_v1, %v39_v5  ;;  %v111_v22 = vmul.f32 %v317_v1, %v40_v6  ;;  %v112_v23 = vmul.f32 %v317_v1, %v41_v7 }
  0x45   :  { %v181_v32 = vadd.f32 %v322_v2, %v110_v21  ;;  %v182_v33 = vadd.f32 %v322_v2, %v111_v22  ;;  %v183_v34 = vadd.f32 %v322_v2, %v112_v23 }
  0x4a   :  { %v42_v12 = vld [vmem:[%s897_s0 + $0xe0] sm:$0xff]  ;;  %v43_v13 = vld [vmem:[%s897_s0 + $0xe8] sm:$0xff]  ;;  %v44_v14 = vld [vmem:[%s897_s0 + $0xf0] sm:$0xff] }
  0x4b   :  { %237 = vst.msk [vmem:[%s900_s3 + $0x80] sm:$0xff] %vm220_vm0, %v172_v63  ;;  %v113_v26 = vmul.f32 %v317_v1, %v42_v12  ;;  %v114_v27 = vmul.f32 %v317_v1, %v43_v13  ;;  %v115_v28 = vmul.f32 %v317_v1, %v44_v14 }
  0x4d   :  { %v184_v39 = vadd.f32 %v322_v2, %v113_v26  ;;  %v185_v40 = vadd.f32 %v322_v2, %v114_v27  ;;  %v186_v41 = vadd.f32 %v322_v2, %v115_v28 }
  0x52   :  { %v45_v19 = vld [vmem:[%s897_s0 + $0xf8] sm:$0xff] }
  0x53   :  { %238 = vst.msk [vmem:[%s900_s3 + $0x88] sm:$0xff] %vm220_vm0, %v173_v8  ;;  %239 = vst.msk [vmem:[%s900_s3 + $0x90] sm:$0xff] %vm220_vm0, %v174_v9  ;;  %v116_v35 = vmul.f32 %v317_v1, %v45_v19 }
  0x54   :  { %240 = vst.msk [vmem:[%s900_s3 + $0x98] sm:$0xff] %vm220_vm0, %v175_v10 }
  0x55   :  { %v187_v44 = vadd.f32 %v322_v2, %v116_v35 }
  0x5b   :  { %v46_v24 = vld [vmem:[%s897_s0 + $0x100] sm:$0xff] }
  0x5c   :  { %241 = vst.msk [vmem:[%s900_s3 + $0xa0] sm:$0xff] %vm220_vm0, %v176_v15  ;;  %242 = vst.msk [vmem:[%s900_s3 + $0xa8] sm:$0xff] %vm220_vm0, %v177_v16  ;;  %v117_v42 = vmul.f32 %v317_v1, %v46_v24 }
  0x5d   :  { %243 = vst.msk [vmem:[%s900_s3 + $0xb0] sm:$0xff] %vm220_vm0, %v178_v17 }
  0x5e   :  { %v188_v49 = vadd.f32 %v322_v2, %v117_v42 }
  0x64   :  { %v47_v29 = vld [vmem:[%s897_s0 + $0x108] sm:$0xff]  ;;  %v48_v30 = vld [vmem:[%s897_s0 + $0x110] sm:$0xff]  ;;  %v49_v31 = vld [vmem:[%s897_s0 + $0x118] sm:$0xff] }
  0x65   :  { %244 = vst.msk [vmem:[%s900_s3 + $0xb8] sm:$0xff] %vm220_vm0, %v179_v20  ;;  %v118_v45 = vmul.f32 %v317_v1, %v47_v29  ;;  %v119_v46 = vmul.f32 %v317_v1, %v48_v30  ;;  %v120_v47 = vmul.f32 %v317_v1, %v49_v31 }
  0x67   :  { %v189_v56 = vadd.f32 %v322_v2, %v118_v45  ;;  %v190_v57 = vadd.f32 %v322_v2, %v119_v46  ;;  %v191_v58 = vadd.f32 %v322_v2, %v120_v47 }
  0x6c   :  { %v50_v36 = vld [vmem:[%s897_s0 + $0x120] sm:$0xff]  ;;  %v51_v37 = vld [vmem:[%s897_s0 + $0x128] sm:$0xff]  ;;  %v52_v38 = vld [vmem:[%s897_s0 + $0x130] sm:$0xff] }
  0x6d   :  { %245 = vst.msk [vmem:[%s900_s3 + $0xc0] sm:$0xff] %vm220_vm0, %v180_v25  ;;  %v121_v50 = vmul.f32 %v317_v1, %v50_v36  ;;  %v122_v51 = vmul.f32 %v317_v1, %v51_v37  ;;  %v123_v52 = vmul.f32 %v317_v1, %v52_v38 }
  0x6f   :  { %v192_v63 = vadd.f32 %v322_v2, %v121_v50  ;;  %v193_v0 = vadd.f32 %v322_v2, %v122_v51  ;;  %v194_v3 = vadd.f32 %v322_v2, %v123_v52 }
  0x74   :  { %v53_v43 = vld [vmem:[%s897_s0 + $0x138] sm:$0xff] }
  0x75   :  { %246 = vst.msk [vmem:[%s900_s3 + $0xc8] sm:$0xff] %vm220_vm0, %v181_v32  ;;  %247 = vst.msk [vmem:[%s900_s3 + $0xd0] sm:$0xff] %vm220_vm0, %v182_v33  ;;  %v124_v59 = vmul.f32 %v317_v1, %v53_v43 }
  0x76   :  { %248 = vst.msk [vmem:[%s900_s3 + $0xd8] sm:$0xff] %vm220_vm0, %v183_v34 }
  0x77   :  { %v195_v6 = vadd.f32 %v322_v2, %v124_v59 }
  0x7d   :  { %v54_v48 = vld [vmem:[%s897_s0 + $0x140] sm:$0xff] }
  0x7e   :  { %249 = vst.msk [vmem:[%s900_s3 + $0xe0] sm:$0xff] %vm220_vm0, %v184_v39  ;;  %250 = vst.msk [vmem:[%s900_s3 + $0xe8] sm:$0xff] %vm220_vm0, %v185_v40  ;;  %v125_v4 = vmul.f32 %v317_v1, %v54_v48 }
  0x7f   :  { %251 = vst.msk [vmem:[%s900_s3 + $0xf0] sm:$0xff] %vm220_vm0, %v186_v41 }
  0x80   :  { %v196_v11 = vadd.f32 %v322_v2, %v125_v4 }
  0x86   :  { %v55_v53 = vld [vmem:[%s897_s0 + $0x148] sm:$0xff]  ;;  %v56_v54 = vld [vmem:[%s897_s0 + $0x150] sm:$0xff]  ;;  %v57_v55 = vld [vmem:[%s897_s0 + $0x158] sm:$0xff] }
  0x87   :  { %252 = vst.msk [vmem:[%s900_s3 + $0xf8] sm:$0xff] %vm220_vm0, %v187_v44  ;;  %v126_v7 = vmul.f32 %v317_v1, %v55_v53  ;;  %v127_v8 = vmul.f32 %v317_v1, %v56_v54  ;;  %v128_v9 = vmul.f32 %v317_v1, %v57_v55 }
  0x89   :  { %v197_v18 = vadd.f32 %v322_v2, %v126_v7  ;;  %v198_v19 = vadd.f32 %v322_v2, %v127_v8  ;;  %v199_v20 = vadd.f32 %v322_v2, %v128_v9 }
  0x8e   :  { %v58_v60 = vld [vmem:[%s897_s0 + $0x160] sm:$0xff]  ;;  %v59_v61 = vld [vmem:[%s897_s0 + $0x168] sm:$0xff]  ;;  %v60_v62 = vld [vmem:[%s897_s0 + $0x170] sm:$0xff] }
  0x8f   :  { %253 = vst.msk [vmem:[%s900_s3 + $0x100] sm:$0xff] %vm220_vm0, %v188_v49  ;;  %v129_v12 = vmul.f32 %v317_v1, %v58_v60  ;;  %v130_v13 = vmul.f32 %v317_v1, %v59_v61  ;;  %v131_v14 = vmul.f32 %v317_v1, %v60_v62 }
  0x91   :  { %v200_v25 = vadd.f32 %v322_v2, %v129_v12  ;;  %v201_v26 = vadd.f32 %v322_v2, %v130_v13  ;;  %v202_v27 = vadd.f32 %v322_v2, %v131_v14 }
  0x96   :  { %v61_v5 = vld [vmem:[%s897_s0 + $0x178] sm:$0xff] }
  0x97   :  { %254 = vst.msk [vmem:[%s900_s3 + $0x108] sm:$0xff] %vm220_vm0, %v189_v56  ;;  %255 = vst.msk [vmem:[%s900_s3 + $0x110] sm:$0xff] %vm220_vm0, %v190_v57  ;;  %v132_v21 = vmul.f32 %v317_v1, %v61_v5 }
  0x98   :  { %256 = vst.msk [vmem:[%s900_s3 + $0x118] sm:$0xff] %vm220_vm0, %v191_v58 }
  0x99   :  { %v203_v30 = vadd.f32 %v322_v2, %v132_v21 }
  0x9f   :  { %v62_v10 = vld [vmem:[%s897_s0 + $0x180] sm:$0xff] }
  0xa0   :  { %257 = vst.msk [vmem:[%s900_s3 + $0x120] sm:$0xff] %vm220_vm0, %v192_v63  ;;  %258 = vst.msk [vmem:[%s900_s3 + $0x128] sm:$0xff] %vm220_vm0, %v193_v0  ;;  %v133_v28 = vmul.f32 %v317_v1, %v62_v10 }
  0xa1   :  { %259 = vst.msk [vmem:[%s900_s3 + $0x130] sm:$0xff] %vm220_vm0, %v194_v3 }
  0xa2   :  { %v204_v35 = vadd.f32 %v322_v2, %v133_v28 }
  0xa8   :  { %v63_v15 = vld [vmem:[%s897_s0 + $0x188] sm:$0xff]  ;;  %v64_v16 = vld [vmem:[%s897_s0 + $0x190] sm:$0xff]  ;;  %v65_v17 = vld [vmem:[%s897_s0 + $0x198] sm:$0xff] }
  0xa9   :  { %260 = vst.msk [vmem:[%s900_s3 + $0x138] sm:$0xff] %vm220_vm0, %v195_v6  ;;  %v134_v31 = vmul.f32 %v317_v1, %v63_v15  ;;  %v135_v32 = vmul.f32 %v317_v1, %v64_v16  ;;  %v136_v33 = vmul.f32 %v317_v1, %v65_v17 }
  0xab   :  { %v205_v42 = vadd.f32 %v322_v2, %v134_v31  ;;  %v206_v43 = vadd.f32 %v322_v2, %v135_v32  ;;  %v207_v44 = vadd.f32 %v322_v2, %v136_v33 }
  0xb0   :  { %v66_v22 = vld [vmem:[%s897_s0 + $0x1a0] sm:$0xff]  ;;  %v67_v23 = vld [vmem:[%s897_s0 + $0x1a8] sm:$0xff]  ;;  %v68_v24 = vld [vmem:[%s897_s0 + $0x1b0] sm:$0xff] }
  0xb1   :  { %261 = vst.msk [vmem:[%s900_s3 + $0x140] sm:$0xff] %vm220_vm0, %v196_v11  ;;  %v137_v36 = vmul.f32 %v317_v1, %v66_v22  ;;  %v138_v37 = vmul.f32 %v317_v1, %v67_v23  ;;  %v139_v38 = vmul.f32 %v317_v1, %v68_v24 }
  0xb3   :  { %v208_v49 = vadd.f32 %v322_v2, %v137_v36  ;;  %v209_v50 = vadd.f32 %v322_v2, %v138_v37  ;;  %v210_v51 = vadd.f32 %v322_v2, %v139_v38 }
  0xb8   :  { %v69_v29 = vld [vmem:[%s897_s0 + $0x1b8] sm:$0xff] }
  0xb9   :  { %262 = vst.msk [vmem:[%s900_s3 + $0x148] sm:$0xff] %vm220_vm0, %v197_v18  ;;  %263 = vst.msk [vmem:[%s900_s3 + $0x150] sm:$0xff] %vm220_vm0, %v198_v19  ;;  %v140_v45 = vmul.f32 %v317_v1, %v69_v29 }
  0xba   :  { %264 = vst.msk [vmem:[%s900_s3 + $0x158] sm:$0xff] %vm220_vm0, %v199_v20 }
  0xbb   :  { %v211_v54 = vadd.f32 %v322_v2, %v140_v45 }
  0xc1   :  { %v70_v34 = vld [vmem:[%s897_s0 + $0x1c0] sm:$0xff] }
  0xc2   :  { %265 = vst.msk [vmem:[%s900_s3 + $0x160] sm:$0xff] %vm220_vm0, %v200_v25  ;;  %266 = vst.msk [vmem:[%s900_s3 + $0x168] sm:$0xff] %vm220_vm0, %v201_v26  ;;  %v141_v52 = vmul.f32 %v317_v1, %v70_v34 }
  0xc3   :  { %267 = vst.msk [vmem:[%s900_s3 + $0x170] sm:$0xff] %vm220_vm0, %v202_v27 }
  0xc4   :  { %v212_v58 = vadd.f32 %v322_v2, %v141_v52 }
  0xca   :  { %v71_v39 = vld [vmem:[%s897_s0 + $0x1c8] sm:$0xff]  ;;  %v72_v40 = vld [vmem:[%s897_s0 + $0x1d0] sm:$0xff]  ;;  %v73_v41 = vld [vmem:[%s897_s0 + $0x1d8] sm:$0xff] }
  0xcb   :  { %268 = vst.msk [vmem:[%s900_s3 + $0x178] sm:$0xff] %vm220_vm0, %v203_v30  ;;  %v142_v55 = vmul.f32 %v317_v1, %v71_v39  ;;  %v143_v56 = vmul.f32 %v317_v1, %v72_v40  ;;  %v144_v57 = vmul.f32 %v317_v1, %v73_v41 }
  0xcd   :  { %v213_v62 = vadd.f32 %v322_v2, %v142_v55  ;;  %v214_v63 = vadd.f32 %v322_v2, %v143_v56  ;;  %v215_v0 = vadd.f32 %v322_v2, %v144_v57 }
  0xd2   :  { %v74_v46 = vld [vmem:[%s897_s0 + $0x1e0] sm:$0xff]  ;;  %v75_v47 = vld [vmem:[%s897_s0 + $0x1e8] sm:$0xff]  ;;  %v76_v48 = vld [vmem:[%s897_s0 + $0x1f0] sm:$0xff] }
  0xd3   :  { %269 = vst.msk [vmem:[%s900_s3 + $0x180] sm:$0xff] %vm220_vm0, %v204_v35  ;;  %v145_v59 = vmul.f32 %v317_v1, %v74_v46  ;;  %v146_v60 = vmul.f32 %v317_v1, %v75_v47  ;;  %v147_v61 = vmul.f32 %v317_v1, %v76_v48 }
  0xd5   :  { %v216_v4 = vadd.f32 %v322_v2, %v145_v59  ;;  %v217_v5 = vadd.f32 %v322_v2, %v146_v60  ;;  %v218_v6 = vadd.f32 %v322_v2, %v147_v61 }
  0xda   :  { %v77_v53 = vld [vmem:[%s897_s0 + $0x1f8] sm:$0xff] }
  0xdb   :  { %270 = vst.msk [vmem:[%s900_s3 + $0x188] sm:$0xff] %vm220_vm0, %v205_v42  ;;  %271 = vst.msk [vmem:[%s900_s3 + $0x190] sm:$0xff] %vm220_vm0, %v206_v43  ;;  %v148_v3 = vmul.f32 %v317_v1, %v77_v53 }
  0xdc   :  { %272 = vst.msk [vmem:[%s900_s3 + $0x198] sm:$0xff] %vm220_vm0, %v207_v44  ;;  %273 = vst.msk [vmem:[%s900_s3 + $0x1a0] sm:$0xff] %vm220_vm0, %v208_v49 }
  0xdd   :  { %274 = vst.msk [vmem:[%s900_s3 + $0x1a8] sm:$0xff] %vm220_vm0, %v209_v50  ;;  %275 = vst.msk [vmem:[%s900_s3 + $0x1b0] sm:$0xff] %vm220_vm0, %v210_v51  ;;  %v219_v1 = vadd.f32 %v322_v2, %v148_v3 }
  0xde   :  { %276 = vst.msk [vmem:[%s900_s3 + $0x1b8] sm:$0xff] %vm220_vm0, %v211_v54  ;;  %277 = vst.msk [vmem:[%s900_s3 + $0x1c0] sm:$0xff] %vm220_vm0, %v212_v58 }
  0xdf   :  { %278 = vst.msk [vmem:[%s900_s3 + $0x1c8] sm:$0xff] %vm220_vm0, %v213_v62  ;;  %279 = vst.msk [vmem:[%s900_s3 + $0x1d0] sm:$0xff] %vm220_vm0, %v214_v63 }
  0xe0   :  { %280 = vst.msk [vmem:[%s900_s3 + $0x1d8] sm:$0xff] %vm220_vm0, %v215_v0  ;;  %281 = vst.msk [vmem:[%s900_s3 + $0x1e0] sm:$0xff] %vm220_vm0, %v216_v4 }
  0xe1   :  { %282 = vst.msk [vmem:[%s900_s3 + $0x1e8] sm:$0xff] %vm220_vm0, %v217_v5  ;;  %283 = vst.msk [vmem:[%s900_s3 + $0x1f0] sm:$0xff] %vm220_vm0, %v218_v6 }
  0xe2   :  { %284 = vst.msk [vmem:[%s900_s3 + $0x1f8] sm:$0xff] %vm220_vm0, %v219_v1 }

// kernel: unit_tcn_forward.2
= control target key start
LH: loop header
LB: loop body
LE: loop exit
PB: predicated region body
PF: predicated region fallthrough
CT: control target
= control target key end

     0   :  { %s5391_s18 = smov 0   ;;  %s5393_s19 = smov 0   ;;  %s6002_s0 = inlined_call_operand.vmem [shape: bf16[2,384,4], index: 0, kind: input, shape index: {}]   ;;  %s6003_s1 = inlined_call_operand.vmem [shape: bf16[9,4,8], index: 1, kind: input, shape index: {}]   ;;  %s6004_s2 = inlined_call_operand.vmem [shape: f32[1,8], index: 2, kind: input, shape index: {}]   ;;  %s6005_s3 = inlined_call_operand.vmem [shape: f32[2,256,8], index: 3, kind: output, shape index: {0}]   ;;  %s6006_s4 = inlined_call_operand.vmem [shape: f32[2,1,8], index: 4, kind: output, shape index: {1}]   ;;  %s6007_s5 = inlined_call_operand.vmem [shape: f32[2,1,8], index: 5, kind: output, shape index: {2}]  }
   0x1   :  { %s5395_s20 = smov 0  }
   0x2 LB: > { %s28_s21 = sadd.s32 1, %s5354_s19  ;;  %p3879_p0 = scmp.ge.s32.totalorder %s5358_s20, 1  ;;  %s5358_s20 = sphi %s5395_s20, %s16_s20   ;;  %s5354_s19 = sphi %s5393_s19, %s6009_s19   ;;  %s5350_s18 = sphi %s5391_s18, %s6008_s18  }
   0x3   : > { %p30_p1 = scmp.ge.s32.totalorder %s28_s21, 2  ;;  %p206_p2 = scmp.lt.s32.totalorder %s5358_s20, 3 }
   0x5   : > { %s6011_s21 = smov (%p30_p1, %s28_s21), 0  ;;  %p207_p3 = pnand %p3879_p0, %p206_p2 }
   0x6   : > { %v3915_v0 = vld [vmem:[%s6003_s1 + $0x2] sm:$0x3] (!%p207_p3)  ;;  %vm479_vm0 = vcmask (!%p207_p3), 1041408   ;;  %v5415_v1 = vld [vmem:[%s6003_s1 + $0x8] sm:$0x3] (!%p207_p3)  ;;  %p244_p4 = scmp.lt.s32.totalorder (!%p207_p3), %s5350_s18, 1 }
   0x7   : > { %210 = sbr.rel (%p207_p3) target bundleno = 541 (0x21d), region = 32  ;;  %5156 = vmatprep.subr.msk.bf16.mxu1 (!%p207_p3), %vm479_vm0, %v3915_v0  ;;  %5160 = vmatprep.subr.msk.bf16.mxu0 (!%p207_p3), %vm479_vm0, %v5415_v1  ;;  %v481_v2 = vsel (!%p207_p3), %vm479_vm0, %v3915_v0, 0  ;;  %v5423_v3 = vsel (!%p207_p3), %vm479_vm0, %v5415_v1, 0  ;;  %v310_v4 = vld [vmem:[%s6003_s1] sm:$0x3] (!%p207_p3)  ;;  %vm430_vm1 = vcmask (!%p207_p3), 31744  }
   0x8   : > { %4593 = vmatpush3.bf16.msra.mxu1 (!%p207_p3), %v481_v2  ;;  %4729 = vmatpush3.bf16.msra.mxu0 (!%p207_p3), %v5423_v3  ;;  %v4207_v5 = vld [vmem:[%s6003_s1 + $0xa] sm:$0x3] (!%p207_p3)  ;;  %v773_v9 = vsel (!%p207_p3), %vm479_vm0, %v310_v4, 0  ;;  %v4272_v10 = vld [vmem:[%s6003_s1 + $0xc] sm:$0x3] (!%p207_p3)  ;;  %vm270_vm2 = vcmask (!%p207_p3), 57344  }
   0x9   : > { %5157 = vmatprep.subr.msk.bf16.mxu1 (!%p207_p3), %vm479_vm0, %v310_v4  ;;  %5162 = vmatprep.subr.msk.bf16.mxu0 (!%p207_p3), %vm479_vm0, %v4207_v5  ;;  %v2193_v12 = vsel (!%p207_p3), %vm479_vm0, %v4207_v5, 0  ;;  %v5456_v13 = vld [vmem:[%s6003_s1 + $0x4] sm:$0x3] (!%p207_p3)  ;;  %v2556_v32 = vsel (!%p207_p3), %vm479_vm0, %v4272_v10, 0  ;;  %v5500_v33 = vld [vmem:[%s6003_s1 + $0xe] sm:$0x3] (!%p207_p3) }
   0xa   : > { %v1104_v49 = vsel (!%p207_p3), %vm479_vm0, %v5456_v13, 0  ;;  %v5541_v51 = vld [vmem:[%s6003_s1 + $0x6] sm:$0x3] (!%p207_p3)  ;;  %vm3478_vm3 = vcmask (!%p207_p3), 64512  }
   0xe   : > { %s6013_s18 = smov (!%p244_p4, %s5350_s18), 1 }
   0xf   : > { %s5166_s30 = smul.u32 192, %s6013_s18  ;;  %s5780_s25 = scalar_lea.vmem %s6006_s4, %s6013_s18 }
  0x10   : > { %s5786_s28 = scalar_lea.vmem %s6007_s5, %s6013_s18  ;;  %s4438_s29 = sshll.u32 %s6013_s18, 8 }
  0x11   : > { %s5440_s8 = scalar_lea.vmem %s6002_s0, %s5166_s30  ;;  %s5817_s9 = scalar_lea.vmem %s6005_s3, %s4438_s29 }
  0x12   : > { %v5192_v6 = vld [vmem:[%s5440_s8 + $0x8] sm:$0xff]   ;;  %v5193_v7 = vld [vmem:[%s5440_s8 + $0x20] sm:$0xff]   ;;  %v5194_v8 = vld [vmem:[%s5440_s8 + $0x10] sm:$0xff]  }
  0x13   : > { %4594 = vmatprep.mubr.msk.bf16.mxu1 %vm430_vm1, %v5192_v6  ;;  %4730 = vmatprep.mubr.msk.bf16.mxu0 %vm430_vm1, %v5193_v7  ;;  %v5195_v11 = vld [vmem:[%s5440_s8 + $0x28] sm:$0xff]   ;;  %v5196_v14 = vld [vmem:[%s5440_s8 + $0x18] sm:$0xff]   ;;  %v5197_v15 = vld [vmem:[%s5440_s8 + $0x30] sm:$0xff]   ;;  %v2919_v6 = vsel %vm479_vm0, %v5500_v33, 0 }
  0x14   : > { %4595 = vmatmul.mubr.msk.bf16.vlgmr.msra.gmra.mrb[0].mxu1 %vm430_vm1, %v5194_v8  ;;  %4731 = vmatmul.mubr.msk.bf16.vlgmr.msra.gmra.mrb[0].mxu0 %vm430_vm1, %v5195_v11  ;;  %v5198_v16 = vld [vmem:[%s5440_s8 + $0x20] sm:$0xff]   ;;  %v5199_v17 = vld [vmem:[%s5440_s8 + $0x38] sm:$0xff]   ;;  %v5200_v18 = vld [vmem:[%s5440_s8 + $0x28] sm:$0xff]  }
  0x15   : > { %4627 = vmatpush3.bf16.msra.mxu1 %v773_v9  ;;  %4763 = vmatpush3.bf16.msra.mxu0 %v2193_v12  ;;  %v5201_v19 = vld [vmem:[%s5440_s8 + $0x40] sm:$0xff]   ;;  %v5202_v20 = vld [vmem:[%s5440_s8 + $0x30] sm:$0xff]   ;;  %v5203_v21 = vld [vmem:[%s5440_s8 + $0x48] sm:$0xff]  }
  0x16   : > { %4598 = vmatprep.mubr.msk.bf16.mxu1 %vm430_vm1, %v5196_v14  ;;  %4734 = vmatprep.mubr.msk.bf16.mxu0 %vm430_vm1, %v5197_v15  ;;  %v5204_v22 = vld [vmem:[%s5440_s8 + $0x38] sm:$0xff]   ;;  %v5205_v23 = vld [vmem:[%s5440_s8 + $0x50] sm:$0xff]   ;;  %v5206_v24 = vld [vmem:[%s5440_s8 + $0x40] sm:$0xff]  }
  0x17   : > { %5163 = vmatprep.subr.msk.bf16.mxu0 %vm479_vm0, %v4272_v10  ;;  %5158 = vmatprep.subr.msk.bf16.mxu1 %vm479_vm0, %v5456_v13  ;;  %v5207_v25 = vld [vmem:[%s5440_s8 + $0x58] sm:$0xff]   ;;  %v5208_v26 = vld [vmem:[%s5440_s8 + $0x48] sm:$0xff]   ;;  %v5210_v28 = vld [vmem:[%s5440_s8 + $0x50] sm:$0xff]  }
  0x18   : > { %v5209_v27 = vld [vmem:[%s5440_s8 + $0x28] sm:$0xff]   ;;  %v5211_v29 = vld [vmem:[%s5440_s8 + $0x30] sm:$0xff]   ;;  %v5212_v30 = vld [vmem:[%s5440_s8 + $0x58] sm:$0xff]  }
  0x19   : > { %v5213_v31 = vld [vmem:[%s5440_s8 + $0x38] sm:$0xff]   ;;  %v5214_v34 = vld [vmem:[%s5440_s8 + $0x60] sm:$0xff]   ;;  %v5216_v36 = vld [vmem:[%s5440_s8 + $0x68] sm:$0xff]  }
  0x1a   : > { %v5215_v35 = vld [vmem:[%s5440_s8 + $0x40] sm:$0xff]   ;;  %v5217_v37 = vld [vmem:[%s5440_s8 + $0x48] sm:$0xff]   ;;  %v5218_v38 = vld [vmem:[%s5440_s8 + $0x70] sm:$0xff]  }
  0x1b   : > { %v5219_v39 = vld [vmem:[%s5440_s8 + $0x50] sm:$0xff]   ;;  %v5220_v40 = vld [vmem:[%s5440_s8 + $0x78] sm:$0xff]   ;;  %v5222_v42 = vld [vmem:[%s5440_s8 + $0x80] sm:$0xff]  }
  0x1c   : > { %4599 = vmatmul.mubr.msk.bf16.gmra.mrb[4].mxu1 %vm430_vm1, %v5198_v16  ;;  %4735 = vmatmul.mubr.msk.bf16.gmra.mrb[4].mxu0 %vm430_vm1, %v5199_v17  ;;  %v5221_v41 = vld [vmem:[%s5440_s8 + $0x58] sm:$0xff]   ;;  %v5223_v43 = vld [vmem:[%s5440_s8 + $0x60] sm:$0xff]   ;;  %v5225_v45 = vld [vmem:[%s5440_s8 + $0x68] sm:$0xff]  }
  0x1d   : > { %4602 = vmatprep.mubr.msk.bf16.mxu1 %vm430_vm1, %v5200_v18  ;;  %4738 = vmatprep.mubr.msk.bf16.mxu0 %vm430_vm1, %v5201_v19  ;;  %v5224_v44 = vld [vmem:[%s5440_s8] sm:$0xff]   ;;  %v5226_v46 = vld [vmem:[%s5440_s8 + $0x8] sm:$0xff]   ;;  %v5227_v47 = vld [vmem:[%s5440_s8 + $0x70] sm:$0xff]  }
  0x1e   : > { %v5228_v48 = vld [vmem:[%s5440_s8 + $0x10] sm:$0xff]   ;;  %v5229_v50 = vld [vmem:[%s5440_s8 + $0x78] sm:$0xff]   ;;  %v5231_v53 = vld [vmem:[%s5440_s8 + $0x80] sm:$0xff]  }
  0x1f   : > { %v5230_v52 = vld [vmem:[%s5440_s8 + $0x18] sm:$0xff]   ;;  %v5232_v54 = vld [vmem:[%s5440_s8 + $0x20] sm:$0xff]   ;;  %v5233_v55 = vld [vmem:[%s5440_s8 + $0x88] sm:$0xff]  }
  0x20   : > { %v5234_v56 = vld [vmem:[%s5440_s8 + $0x28] sm:$0xff]   ;;  %v5235_v57 = vld [vmem:[%s5440_s8 + $0x90] sm:$0xff]   ;;  %v5237_v59 = vld [vmem:[%s5440_s8 + $0x98] sm:$0xff]  }
  0x21   : > { %v5236_v58 = vld [vmem:[%s5440_s8 + $0x30] sm:$0xff]   ;;  %v5238_v60 = vld [vmem:[%s5440_s8 + $0x38] sm:$0xff]   ;;  %v5239_v61 = vld [vmem:[%s5440_s8 + $0xa0] sm:$0xff]  }
  0x22   : > { %v5240_v62 = vld [vmem:[%s5440_s8 + $0x40] sm:$0xff]   ;;  %v5241_v63 = vld [vmem:[%s5440_s8 + $0x30] sm:$0xff]   ;;  %v5242_v0 = vld [vmem:[%s5440_s8 + $0x48] sm:$0xff]  }
  0x23   : > { %v5243_v2 = vld [vmem:[%s5440_s8 + $0x38] sm:$0xff]   ;;  %v5244_v4 = vld [vmem:[%s5440_s8 + $0x50] sm:$0xff]   ;;  %v5245_v5 = vld [vmem:[%s5440_s8 + $0x40] sm:$0xff]  }
  0x24   : > { %4603 = vmatmul.mubr.msk.bf16.gmra.mrb[8].mxu1 %vm430_vm1, %v5202_v20  ;;  %4739 = vmatmul.mubr.msk.bf16.gmra.mrb[8].mxu0 %vm430_vm1, %v5203_v21  ;;  %v5582_v7 = vld [vmem:[%s6003_s1 + $0x10] sm:$0x3]  ;;  %v5246_v8 = vld [vmem:[%s5440_s8 + $0x58] sm:$0xff]   ;;  %v5247_v9 = vld [vmem:[%s5440_s8 + $0x48] sm:$0xff]  }
  0x25   : > { %4606 = vmatprep.mubr.msk.bf16.mxu1 %vm430_vm1, %v5204_v22  ;;  %4742 = vmatprep.mubr.msk.bf16.mxu0 %vm430_vm1, %v5205_v23  ;;  %v5248_v10 = vld [vmem:[%s5440_s8 + $0x60] sm:$0xff]   ;;  %v5249_v11 = vld [vmem:[%s5440_s8 + $0x50] sm:$0xff]   ;;  %v5250_v12 = vld [vmem:[%s5440_s8 + $0x68] sm:$0xff]   ;;  %v1467_v23 = vsel %vm479_vm0, %v5541_v51, 0 }
  0x26   : > { %v5251_v13 = vld [vmem:[%s5440_s8 + $0x58] sm:$0xff]   ;;  %v5252_v14 = vld [vmem:[%s5440_s8 + $0x70] sm:$0xff]   ;;  %v5253_v15 = vld [vmem:[%s5440_s8 + $0x60] sm:$0xff]  }
  0x27   : > { %v5254_v16 = vld [vmem:[%s5440_s8 + $0x78] sm:$0xff]   ;;  %v5255_v17 = vld [vmem:[%s5440_s8 + $0x68] sm:$0xff]   ;;  %v5256_v18 = vld [vmem:[%s5440_s8 + $0x10] sm:$0xff]  }
  0x28   : > { %v5257_v19 = vld [vmem:[%s5440_s8 + $0x70] sm:$0xff]   ;;  %v5258_v20 = vld [vmem:[%s5440_s8 + $0x18] sm:$0xff]   ;;  %v5260_v22 = vld [vmem:[%s5440_s8 + $0x20] sm:$0xff]  }
  0x29   : > { %v5259_v21 = vld [vmem:[%s5440_s8 + $0x78] sm:$0xff]  }
  0x2c   : > { %4607 = vmatmul.mubr.msk.bf16.gmra.mrb[12].mxu1 %vm430_vm1, %v5206_v24  ;;  %4743 = vmatmul.mubr.msk.bf16.gmra.mrb[12].mxu0 %vm430_vm1, %v5207_v25  ;;  %v5261_v24 = vld [vmem:[%s5440_s8 + $0x80] sm:$0xff]   ;;  %v5262_v25 = vld [vmem:[%s5440_s8 + $0x28] sm:$0xff]  }
  0x2d   : > { %4610 = vmatprep.mubr.msk.bf16.mxu1 %vm430_vm1, %v5208_v26  ;;  %4764 = vmatprep.mubr.msk.bf16.mxu0 %vm430_vm1, %v5209_v27  ;;  %v5263_v26 = vld [vmem:[%s5440_s8 + $0x88] sm:$0xff]   ;;  %v5264_v27 = vld [vmem:[%s5440_s8 + $0x30] sm:$0xff]  }
  0x34   : > { %4611 = vmatmul.mubr.msk.bf16.gmra.mrb[16].mxu1 %vm430_vm1, %v5210_v28  ;;  %4765 = vmatmul.mubr.msk.bf16.vlgmr.msra.gmra.mrb[0].mxu0 %vm430_vm1, %v5211_v29  ;;  %v5265_v28 = vld [vmem:[%s5440_s8 + $0x90] sm:$0xff]   ;;  %v5266_v29 = vld [vmem:[%s5440_s8 + $0x38] sm:$0xff]  }
  0x35   : > { %4614 = vmatprep.mubr.msk.bf16.mxu1 %vm430_vm1, %v5212_v30  ;;  %4797 = vmatpush3.bf16.msra.mxu0 %v2556_v32  ;;  %v5267_v30 = vld [vmem:[%s5440_s8 + $0x98] sm:$0xff]   ;;  %v5269_v32 = vld [vmem:[%s5440_s8 + $0xa0] sm:$0xff]  }
  0x36   : > { %4768 = vmatprep.mubr.msk.bf16.mxu0 %vm430_vm1, %v5213_v31  ;;  %5164 = vmatprep.subr.msk.bf16.mxu0 %vm479_vm0, %v5500_v33  ;;  %v5268_v31 = vld [vmem:[%s5440_s8 + $0x40] sm:$0xff]   ;;  %v5271_v33 = vld [vmem:[%s5440_s8 + $0xa8] sm:$0xff]  }
  0x3c   : > { %4615 = vmatmul.mubr.msk.bf16.gmra.mrb[20].mxu1 %vm430_vm1, %v5214_v34  ;;  %4769 = vmatmul.mubr.msk.bf16.gmra.mrb[4].mxu0 %vm430_vm1, %v5215_v35  ;;  %v5272_v34 = vld [vmem:[%s5440_s8 + $0x50] sm:$0xff]   ;;  %v5273_v35 = vld [vmem:[%s5440_s8 + $0x38] sm:$0xff]  }
  0x3d   : > { %4618 = vmatprep.mubr.msk.bf16.mxu1 %vm430_vm1, %v5216_v36  ;;  %4772 = vmatprep.mubr.msk.bf16.mxu0 %vm430_vm1, %v5217_v37  ;;  %v5274_v36 = vld [vmem:[%s5440_s8 + $0x58] sm:$0xff]   ;;  %v5275_v37 = vld [vmem:[%s5440_s8 + $0x40] sm:$0xff]  }
  0x44   : > { %4619 = vmatmul.mubr.msk.bf16.gmra.mrb[24].mxu1 %vm430_vm1, %v5218_v38  ;;  %4773 = vmatmul.mubr.msk.bf16.gmra.mrb[8].mxu0 %vm430_vm1, %v5219_v39  ;;  %v5276_v38 = vld [vmem:[%s5440_s8 + $0x60] sm:$0xff]   ;;  %v5277_v39 = vld [vmem:[%s5440_s8 + $0x48] sm:$0xff]  }
  0x45   : > { %4622 = vmatprep.mubr.msk.bf16.mxu1 %vm430_vm1, %v5220_v40  ;;  %4776 = vmatprep.mubr.msk.bf16.mxu0 %vm430_vm1, %v5221_v41  ;;  %v3282_v40 = vsel %vm479_vm0, %v5582_v7, 0  ;;  %v5278_v41 = vld [vmem:[%s5440_s8 + $0x68] sm:$0xff]  }
  0x4c   : > { %4623 = vmatmul.mubr.msk.bf16.gmra.mrb[28].mxu1 %vm430_vm1, %v5222_v42  ;;  %4777 = vmatmul.mubr.msk.bf16.gmra.mrb[12].mxu0 %vm430_vm1, %v5223_v43  ;;  %v5279_v42 = vld [vmem:[%s5440_s8 + $0x50] sm:$0xff]  }
  0x4d   : > { %4628 = vmatprep.mubr.msk.bf16.mxu1 %vm430_vm1, %v5224_v44  ;;  %4780 = vmatprep.mubr.msk.bf16.mxu0 %vm430_vm1, %v5225_v45  ;;  %v5280_v43 = vld [vmem:[%s5440_s8 + $0x70] sm:$0xff]   ;;  %v5281_v44 = vld [vmem:[%s5440_s8 + $0x58] sm:$0xff]  }
  0x4e   : > { %v5282_v45 = vld [vmem:[%s5440_s8 + $0x78] sm:$0xff]  }
  0x54   : > { %4629 = vmatmul.mubr.msk.bf16.vlgmr.msra.gmra.mrb[0].mxu1 %vm430_vm1, %v5226_v46  ;;  %4781 = vmatmul.mubr.msk.bf16.gmra.mrb[16].mxu0 %vm430_vm1, %v5227_v47  ;;  %v5283_v46 = vld [vmem:[%s5440_s8 + $0x60] sm:$0xff]  }
  0x55   : > { %4661 = vmatpush3.bf16.msra.mxu1 %v1104_v49  ;;  %4632 = vmatprep.mubr.msk.bf16.mxu1 %vm430_vm1, %v5228_v48  ;;  %v5284_v47 = vld [vmem:[%s5440_s8 + $0x80] sm:$0xff]   ;;  %v5285_v48 = vld [vmem:[%s5440_s8 + $0x68] sm:$0xff]  }
  0x56   : > { %4784 = vmatprep.mubr.msk.bf16.mxu0 %vm430_vm1, %v5229_v50  ;;  %5159 = vmatprep.subr.msk.bf16.mxu1 %vm479_vm0, %v5541_v51  ;;  %v5286_v49 = vld [vmem:[%s5440_s8 + $0x88] sm:$0xff]   ;;  %v5287_v50 = vld [vmem:[%s5440_s8 + $0x70] sm:$0xff]   ;;  %v5288_v51 = vld [vmem:[%s5440_s8 + $0x18] sm:$0xff]  }
  0x5c   : > { %4633 = vmatmul.mubr.msk.bf16.gmra.mrb[4].mxu1 %vm430_vm1, %v5230_v52  ;;  %4785 = vmatmul.mubr.msk.bf16.gmra.mrb[20].mxu0 %vm430_vm1, %v5231_v53  ;;  %v5289_v52 = vld [vmem:[%s5440_s8 + $0x78] sm:$0xff]   ;;  %v5290_v53 = vld [vmem:[%s5440_s8 + $0x20] sm:$0xff]  }
  0x5d   : > { %4636 = vmatprep.mubr.msk.bf16.mxu1 %vm430_vm1, %v5232_v54  ;;  %4788 = vmatprep.mubr.msk.bf16.mxu0 %vm430_vm1, %v5233_v55  ;;  %v5291_v54 = vld [vmem:[%s5440_s8 + $0x80] sm:$0xff]   ;;  %v5292_v55 = vld [vmem:[%s5440_s8 + $0x28] sm:$0xff]  }
  0x64   : > { %4637 = vmatmul.mubr.msk.bf16.gmra.mrb[8].mxu1 %vm430_vm1, %v5234_v56  ;;  %4789 = vmatmul.mubr.msk.bf16.gmra.mrb[24].mxu0 %vm430_vm1, %v5235_v57  ;;  %v5293_v56 = vld [vmem:[%s5440_s8 + $0x88] sm:$0xff]   ;;  %v5294_v57 = vld [vmem:[%s5440_s8 + $0x30] sm:$0xff]  }
  0x65   : > { %4640 = vmatprep.mubr.msk.bf16.mxu1 %vm430_vm1, %v5236_v58  ;;  %4792 = vmatprep.mubr.msk.bf16.mxu0 %vm430_vm1, %v5237_v59  ;;  %v5295_v58 = vld [vmem:[%s5440_s8 + $0x90] sm:$0xff]   ;;  %v5296_v59 = vld [vmem:[%s5440_s8 + $0x38] sm:$0xff]  }
  0x6c   : > { %4641 = vmatmul.mubr.msk.bf16.gmra.mrb[12].mxu1 %vm430_vm1, %v5238_v60  ;;  %4793 = vmatmul.mubr.msk.bf16.gmra.mrb[28].mxu0 %vm430_vm1, %v5239_v61  ;;  %v5297_v60 = vld [vmem:[%s5440_s8 + $0x98] sm:$0xff]   ;;  %v5299_v61 = vld [vmem:[%s5440_s8 + $0xa0] sm:$0xff]  }
  0x6d   : > { %4644 = vmatprep.mubr.msk.bf16.mxu1 %vm430_vm1, %v5240_v62  ;;  %4798 = vmatprep.mubr.msk.bf16.mxu0 %vm430_vm1, %v5241_v63  ;;  %v5300_v62 = vld [vmem:[%s5440_s8 + $0x48] sm:$0xff]  }
  0x6e   : > { %v5301_v63 = vld [vmem:[%s5440_s8 + $0xa8] sm:$0xff]  }
  0x74   : > { %4645 = vmatmul.mubr.msk.bf16.gmra.mrb[16].mxu1 %vm430_vm1, %v5242_v0  ;;  %4799 = vmatmul.mubr.msk.bf16.vlgmr.msra.gmra.mrb[0].mxu0 %vm430_vm1, %v5243_v2  ;;  %v5302_v0 = vld [vmem:[%s5440_s8 + $0x50] sm:$0xff]  }
  0x75   : > { %4648 = vmatprep.mubr.msk.bf16.mxu1 %vm430_vm1, %v5244_v4  ;;  %4831 = vmatpush3.bf16.msra.mxu0 %v2919_v6  ;;  %v5303_v2 = vld [vmem:[%s5440_s8 + $0xb0] sm:$0xff]   ;;  %v5304_v4 = vld [vmem:[%s5440_s8 + $0x58] sm:$0xff]   ;;  %v5306_v6 = vld [vmem:[%s5440_s8 + $0x60] sm:$0xff]  }
  0x76   : > { %4802 = vmatprep.mubr.msk.bf16.mxu0 %vm430_vm1, %v5245_v5  ;;  %5165 = vmatprep.subr.msk.bf16.mxu0 %vm479_vm0, %v5582_v7  ;;  %v5305_v5 = vld [vmem:[%s5440_s8 + $0x40] sm:$0xff]   ;;  %v5307_v7 = vld [vmem:[%s5440_s8 + $0x48] sm:$0xff]  }
  0x7c   : > { %4649 = vmatmul.mubr.msk.bf16.gmra.mrb[20].mxu1 %vm430_vm1, %v5246_v8  ;;  %4803 = vmatmul.mubr.msk.bf16.gmra.mrb[4].mxu0 %vm430_vm1, %v5247_v9  ;;  %v5308_v8 = vld [vmem:[%s5440_s8 + $0x68] sm:$0xff]   ;;  %v5309_v9 = vld [vmem:[%s5440_s8 + $0x50] sm:$0xff]  }
  0x7d   : > { %4652 = vmatprep.mubr.msk.bf16.mxu1 %vm430_vm1, %v5248_v10  ;;  %4806 = vmatprep.mubr.msk.bf16.mxu0 %vm430_vm1, %v5249_v11  ;;  %v5310_v10 = vld [vmem:[%s5440_s8 + $0x70] sm:$0xff]   ;;  %v5311_v11 = vld [vmem:[%s5440_s8 + $0x58] sm:$0xff]  }
  0x84   : > { %4653 = vmatmul.mubr.msk.bf16.gmra.mrb[24].mxu1 %vm430_vm1, %v5250_v12  ;;  %4807 = vmatmul.mubr.msk.bf16.gmra.mrb[8].mxu0 %vm430_vm1, %v5251_v13  ;;  %v5312_v12 = vld [vmem:[%s5440_s8 + $0x78] sm:$0xff]   ;;  %v5313_v13 = vld [vmem:[%s5440_s8 + $0x60] sm:$0xff]  }
  0x85   : > { %4656 = vmatprep.mubr.msk.bf16.mxu1 %vm430_vm1, %v5252_v14  ;;  %4810 = vmatprep.mubr.msk.bf16.mxu0 %vm430_vm1, %v5253_v15  ;;  %v5314_v14 = vld [vmem:[%s5440_s8 + $0x80] sm:$0xff]   ;;  %v5315_v15 = vld [vmem:[%s5440_s8 + $0x68] sm:$0xff]  }
  0x8c   : > { %4657 = vmatmul.mubr.msk.bf16.gmra.mrb[28].mxu1 %vm430_vm1, %v5254_v16  ;;  %4811 = vmatmul.mubr.msk.bf16.gmra.mrb[12].mxu0 %vm430_vm1, %v5255_v17  ;;  %v5316_v16 = vld [vmem:[%s5440_s8 + $0x88] sm:$0xff]   ;;  %v5317_v17 = vld [vmem:[%s5440_s8 + $0x70] sm:$0xff]  }
  0x8d   : > { %4662 = vmatprep.mubr.msk.bf16.mxu1 %vm430_vm1, %v5256_v18  ;;  %4814 = vmatprep.mubr.msk.bf16.mxu0 %vm430_vm1, %v5257_v19  ;;  %v5318_v18 = vld [vmem:[%s5440_s8 + $0x90] sm:$0xff]   ;;  %v5319_v19 = vld [vmem:[%s5440_s8 + $0x78] sm:$0xff]  }
  0x94   : > { %4663 = vmatmul.mubr.msk.bf16.vlgmr.msra.gmra.mrb[0].mxu1 %vm430_vm1, %v5258_v20  ;;  %4815 = vmatmul.mubr.msk.bf16.gmra.mrb[16].mxu0 %vm430_vm1, %v5259_v21  ;;  %v5320_v20 = vld [vmem:[%s5440_s8 + $0x60] sm:$0xff]  }
  0x95   : > { %4695 = vmatpush3.bf16.msra.mxu1 %v1467_v23  ;;  %4666 = vmatprep.mubr.msk.bf16.mxu1 %vm430_vm1, %v5260_v22  ;;  %v5321_v21 = vld [vmem:[%s5440_s8 + $0x80] sm:$0xff]   ;;  %v5322_v22 = vld [vmem:[%s5440_s8 + $0x68] sm:$0xff]  }
  0x96   : > { %4818 = vmatprep.mubr.msk.bf16.mxu0 %vm430_vm1, %v5261_v24  ;;  %5161 = vmatprep.subr.msk.bf16.mxu1 %vm479_vm0, %v5415_v1  ;;  %v5270_v1 = vld [vmem:[%s5440_s8 + $0x48] sm:$0xff]   ;;  %v5324_v24 = vld [vmem:[%s5440_s8 + $0x70] sm:$0xff]  }
  0x97   : > { %v5323_v23 = vld [vmem:[%s5440_s8 + $0x88] sm:$0xff]  }
  0x9c   : > { %4667 = vmatmul.mubr.msk.bf16.gmra.mrb[4].mxu1 %vm430_vm1, %v5262_v25  ;;  %4819 = vmatmul.mubr.msk.bf16.gmra.mrb[20].mxu0 %vm430_vm1, %v5263_v26  ;;  %v5325_v25 = vld [vmem:[%s5440_s8 + $0x90] sm:$0xff]   ;;  %v5326_v26 = vld [vmem:[%s5440_s8 + $0x78] sm:$0xff]  }
  0x9d   : > { %4670 = vmatprep.mubr.msk.bf16.mxu1 %vm430_vm1, %v5264_v27  ;;  %4822 = vmatprep.mubr.msk.bf16.mxu0 %vm430_vm1, %v5265_v28  ;;  %v5327_v27 = vld [vmem:[%s5440_s8 + $0x98] sm:$0xff]   ;;  %v5328_v28 = vld [vmem:[%s5440_s8 + $0x80] sm:$0xff]  }
  0xa4   : > { %4671 = vmatmul.mubr.msk.bf16.gmra.mrb[8].mxu1 %vm430_vm1, %v5266_v29  ;;  %4823 = vmatmul.mubr.msk.bf16.gmra.mrb[24].mxu0 %vm430_vm1, %v5267_v30  ;;  %v5329_v29 = vld [vmem:[%s5440_s8 + $0xa0] sm:$0xff]   ;;  %v5330_v30 = vld [vmem:[%s5440_s8 + $0x88] sm:$0xff]  }
  0xa5   : > { %4674 = vmatprep.mubr.msk.bf16.mxu1 %vm430_vm1, %v5268_v31  ;;  %4826 = vmatprep.mubr.msk.bf16.mxu0 %vm430_vm1, %v5269_v32  ;;  %v5331_v31 = vld [vmem:[%s5440_s8 + $0xa8] sm:$0xff]   ;;  %v5332_v32 = vld [vmem:[%s5440_s8 + $0x90] sm:$0xff]  }
  0xac   : > { %4675 = vmatmul.mubr.msk.bf16.gmra.mrb[12].mxu1 %vm430_vm1, %v5270_v1  ;;  %4827 = vmatmul.mubr.msk.bf16.gmra.mrb[28].mxu0 %vm430_vm1, %v5271_v33  ;;  %v5333_v1 = vld [vmem:[%s5440_s8 + $0xb0] sm:$0xff]   ;;  %v5334_v33 = vld [vmem:[%s5440_s8 + $0x98] sm:$0xff]  }
  0xad   : > { %4678 = vmatprep.mubr.msk.bf16.mxu1 %vm430_vm1, %v5272_v34  ;;  %4832 = vmatprep.mubr.msk.bf16.mxu0 %vm430_vm1, %v5273_v35  ;;  %v5335_v34 = vld [vmem:[%s5440_s8 + $0xb8] sm:$0xff]   ;;  %v5360_v35 = vmov 0.0  }
  0xae   : > { %271 = vst.msk [vmem:[%s5780_s25] sm:$0x1] %vm270_vm2, %v5360_v35  ;;  %272 = vst.msk [vmem:[%s5786_s28] sm:$0x1] %vm270_vm2, %v5360_v35 }
  0xb4   : > { %4679 = vmatmul.mubr.msk.bf16.gmra.mrb[16].mxu1 %vm430_vm1, %v5274_v36  ;;  %4833 = vmatmul.mubr.msk.bf16.vlgmr.msra.gmra.mrb[0].mxu0 %vm430_vm1, %v5275_v37 }
  0xb5   : > { %4682 = vmatprep.mubr.msk.bf16.mxu1 %vm430_vm1, %v5276_v38  ;;  %4865 = vmatpush3.bf16.msra.mxu0 %v3282_v40 }
  0xb6   : > { %4836 = vmatprep.mubr.msk.bf16.mxu0 %vm430_vm1, %v5277_v39 }
  0xbc   : > { %4683 = vmatmul.mubr.msk.bf16.gmra.mrb[20].mxu1 %vm430_vm1, %v5278_v41  ;;  %4837 = vmatmul.mubr.msk.bf16.gmra.mrb[4].mxu0 %vm430_vm1, %v5279_v42 }
  0xbd   : > { %4686 = vmatprep.mubr.msk.bf16.mxu1 %vm430_vm1, %v5280_v43  ;;  %4840 = vmatprep.mubr.msk.bf16.mxu0 %vm430_vm1, %v5281_v44 }
  0xc4   : > { %4687 = vmatmul.mubr.msk.bf16.gmra.mrb[24].mxu1 %vm430_vm1, %v5282_v45  ;;  %4841 = vmatmul.mubr.msk.bf16.gmra.mrb[8].mxu0 %vm430_vm1, %v5283_v46 }
  0xc5   : > { %4690 = vmatprep.mubr.msk.bf16.mxu1 %vm430_vm1, %v5284_v47  ;;  %4844 = vmatprep.mubr.msk.bf16.mxu0 %vm430_vm1, %v5285_v48 }
  0xcc   : > { %4691 = vmatmul.mubr.msk.bf16.gmra.mrb[28].mxu1 %vm430_vm1, %v5286_v49  ;;  %4845 = vmatmul.mubr.msk.bf16.gmra.mrb[12].mxu0 %vm430_vm1, %v5287_v50 }
  0xcd   : > { %4696 = vmatprep.mubr.msk.bf16.mxu1 %vm430_vm1, %v5288_v51  ;;  %4848 = vmatprep.mubr.msk.bf16.mxu0 %vm430_vm1, %v5289_v52 }
  0xd4   : > { %4697 = vmatmul.mubr.msk.bf16.vlgmr.msra.gmra.mrb[0].mxu1 %vm430_vm1, %v5290_v53  ;;  %4849 = vmatmul.mubr.msk.bf16.gmra.mrb[16].mxu0 %vm430_vm1, %v5291_v54  ;;  %v5812_v53 = vld [vmem:[%s6004_s2] ss:$0 sm:$0xff] }
  0xd5   : > { %4899 = vmatpush3.bf16.msra.mxu1 %v5423_v3  ;;  %4700 = vmatprep.mubr.msk.bf16.mxu1 %vm430_vm1, %v5292_v55  ;;  %v5298_v3 = vld [vmem:[%s5440_s8 + $0x40] sm:$0xff]  }
  0xd6   : > { %4852 = vmatprep.mubr.msk.bf16.mxu0 %vm430_vm1, %v5293_v56 }
  0xdc   : > { %4701 = vmatmul.mubr.msk.bf16.gmra.mrb[4].mxu1 %vm430_vm1, %v5294_v57  ;;  %4853 = vmatmul.mubr.msk.bf16.gmra.mrb[20].mxu0 %vm430_vm1, %v5295_v58 }
  0xdd   : > { %4704 = vmatprep.mubr.msk.bf16.mxu1 %vm430_vm1, %v5296_v59  ;;  %4856 = vmatprep.mubr.msk.bf16.mxu0 %vm430_vm1, %v5297_v60 }
  0xe4   : > { %4705 = vmatmul.mubr.msk.bf16.gmra.mrb[8].mxu1 %vm430_vm1, %v5298_v3  ;;  %4857 = vmatmul.mubr.msk.bf16.gmra.mrb[24].mxu0 %vm430_vm1, %v5299_v61 }
  0xe5   : > { %4708 = vmatprep.mubr.msk.bf16.mxu1 %vm430_vm1, %v5300_v62  ;;  %4860 = vmatprep.mubr.msk.bf16.mxu0 %vm430_vm1, %v5301_v63 }
  0xec   : > { %4709 = vmatmul.mubr.msk.bf16.gmra.mrb[12].mxu1 %vm430_vm1, %v5302_v0  ;;  %4861 = vmatmul.mubr.msk.bf16.gmra.mrb[28].mxu0 %vm430_vm1, %v5303_v2 }
  0xed   : > { %4712 = vmatprep.mubr.msk.bf16.mxu1 %vm430_vm1, %v5304_v4  ;;  %4866 = vmatprep.mubr.msk.bf16.mxu0 %vm430_vm1, %v5305_v5 }
  0xf4   : > { %4713 = vmatmul.mubr.msk.bf16.gmra.mrb[16].mxu1 %vm430_vm1, %v5306_v6  ;;  %4867 = vmatmul.mubr.msk.bf16.vlgmr.msra.gmra.mrb[0].mxu0 %vm430_vm1, %v5307_v7 }
  0xf5   : > { %4716 = vmatprep.mubr.msk.bf16.mxu1 %vm430_vm1, %v5308_v8  ;;  %4870 = vmatprep.mubr.msk.bf16.mxu0 %vm430_vm1, %v5309_v9 }
  0xfc   : > { %4717 = vmatmul.mubr.msk.bf16.gmra.mrb[20].mxu1 %vm430_vm1, %v5310_v10  ;;  %4871 = vmatmul.mubr.msk.bf16.gmra.mrb[4].mxu0 %vm430_vm1, %v5311_v11 }
  0xfd   : > { %4720 = vmatprep.mubr.msk.bf16.mxu1 %vm430_vm1, %v5312_v12  ;;  %4874 = vmatprep.mubr.msk.bf16.mxu0 %vm430_vm1, %v5313_v13 }
 0x104   : > { %4721 = vmatmul.mubr.msk.bf16.gmra.mrb[24].mxu1 %vm430_vm1, %v5314_v14  ;;  %4875 = vmatmul.mubr.msk.bf16.gmra.mrb[8].mxu0 %vm430_vm1, %v5315_v15 }
 0x105   : > { %4724 = vmatprep.mubr.msk.bf16.mxu1 %vm430_vm1, %v5316_v16  ;;  %4878 = vmatprep.mubr.msk.bf16.mxu0 %vm430_vm1, %v5317_v17 }
 0x10c   : > { %4725 = vmatmul.mubr.msk.bf16.gmra.mrb[28].mxu1 %vm430_vm1, %v5318_v18  ;;  %4879 = vmatmul.mubr.msk.bf16.gmra.mrb[12].mxu0 %vm430_vm1, %v5319_v19 }
 0x10d   : > { %4746 = vmatprep.mubr.msk.bf16.mxu1 %vm430_vm1, %v5320_v20  ;;  %4882 = vmatprep.mubr.msk.bf16.mxu0 %vm430_vm1, %v5321_v21 }
 0x114   : > { %4747 = vmatmul.mubr.msk.bf16.vlgmr.msra.gmra.mrb[16].mxu1 %vm430_vm1, %v5322_v22  ;;  %4883 = vmatmul.mubr.msk.bf16.gmra.mrb[16].mxu0 %vm430_vm1, %v5323_v23 }
 0x115   : > { %4750 = vmatprep.mubr.msk.bf16.mxu1 %vm430_vm1, %v5324_v24  ;;  %4886 = vmatprep.mubr.msk.bf16.mxu0 %vm430_vm1, %v5325_v25 }
 0x11c   : > { %4751 = vmatmul.mubr.msk.bf16.gmra.mrb[20].mxu1 %vm430_vm1, %v5326_v26  ;;  %4887 = vmatmul.mubr.msk.bf16.gmra.mrb[20].mxu0 %vm430_vm1, %v5327_v27 }
 0x11d   : > { %4754 = vmatprep.mubr.msk.bf16.mxu1 %vm430_vm1, %v5328_v28  ;;  %4890 = vmatprep.mubr.msk.bf16.mxu0 %vm430_vm1, %v5329_v29 }
 0x124   : > { %4755 = vmatmul.mubr.msk.bf16.gmra.mrb[24].mxu1 %vm430_vm1, %v5330_v30  ;;  %4891 = vmatmul.mubr.msk.bf16.gmra.mrb[24].mxu0 %vm430_vm1, %v5331_v31 }
 0x125   : > { %4758 = vmatprep.mubr.msk.bf16.mxu1 %vm430_vm1, %v5332_v32  ;;  %4894 = vmatprep.mubr.msk.bf16.mxu0 %vm430_vm1, %v5333_v1 }
 0x12c   : > { %4759 = vmatmul.mubr.msk.bf16.gmra.mrb[28].mxu1 %vm430_vm1, %v5334_v33  ;;  %4895 = vmatmul.mubr.msk.bf16.gmra.mrb[28].mxu0 %vm430_vm1, %v5335_v34 }
 0x1a7   : > { %v4698_v36 = vpop.f32.mrb[0].mxu1 }
 0x1a8   : > { %v1503_v37 = vpop.f32.mrb[1].mxu1 }
 0x1a9   : > { %v4699_v38 = vpop.f32.mrb[2].mxu1 }
 0x1aa   : > { %v1506_v39 = vpop.f32.mrb[3].mxu1 }
 0x1af   : > { %v4702_v40 = vpop.f32.mrb[4].mxu1 }
 0x1b0   : > { %v1519_v41 = vpop.f32.mrb[5].mxu1 }
 0x1b1   : > { %v4703_v42 = vpop.f32.mrb[6].mxu1 }
 0x1b2   : > { %v1522_v43 = vpop.f32.mrb[7].mxu1 }
 0x1b7   : > { %v5792_v44 = vpop.f32.mrb[8].mxu1 }
 0x1b8   : > { %v5794_v45 = vpop.f32.mrb[9].mxu1 }
 0x1b9   : > { %v5796_v46 = vpop.f32.mrb[10].mxu1 }
 0x1ba   : > { %v5798_v47 = vpop.f32.mrb[11].mxu1 }
 0x1bf   : > { %v5800_v48 = vpop.f32.mrb[12].mxu1 }
 0x1c0   : > { %v5802_v49 = vpop.f32.mrb[13].mxu1 }
 0x1c1   : > { %v5804_v50 = vpop.f32.mrb[14].mxu1 }
 0x1c2   : > { %v5806_v51 = vpop.f32.mrb[15].mxu1 }
 0x1c7   : > { %v4868_v52 = vpop.f32.mrb[0].mxu0 }
 0x1c8   : > { %v4900_v54 = vadd.f32 %v4868_v52, %v4698_v36  ;;  %v3318_v55 = vpop.f32.mrb[1].mxu0 }
 0x1c9   : > { %v4901_v56 = vadd.f32 %v3318_v55, %v1503_v37  ;;  %v4869_v57 = vpop.f32.mrb[2].mxu0 }
 0x1ca   : > { %v3664_v58 = vadd.f32 %v4900_v54, %v5812_v53  ;;  %v4902_v59 = vadd.f32 %v4869_v57, %v4699_v38  ;;  %v3321_v60 = vpop.f32.mrb[3].mxu0  ;;  %v3554_v63 = vmul.f32 %v4900_v54, %v4900_v54  ;;  %v3482_v9 = vsel %vm3478_vm3, %v4900_v54, 0.0 }
 0x1cb   : > { %v3552_v3 = vmul.f32 %v4901_v56, %v4901_v56  ;;  %v3662_v61 = vadd.f32 %v4901_v56, %v5812_v53  ;;  %v4903_v62 = vadd.f32 %v3321_v60, %v1506_v39  ;;  %v3479_v2 = vsel %vm3478_vm3, %v4901_v56, 0.0 }
 0x1cc   : > { %3696 = vst.msk [vmem:[%s5817_s9 + $0x10] sm:$0xff] %vm3478_vm3, %v3664_v58  ;;  %v3665_v0 = vadd.f32 %v4902_v59, %v5812_v53  ;;  %v3555_v7 = vmul.f32 %v4902_v59, %v4902_v59  ;;  %v3587_v17 = vsel %vm3478_vm3, %v3554_v63, 0.0  ;;  %v3484_v20 = vsel %vm3478_vm3, %v4902_v59, 0.0 }
 0x1cd   : > { %3694 = vst.msk [vmem:[%s5817_s9] sm:$0xff] %vm3478_vm3, %v3662_v61  ;;  %v3480_v4 = vsel %vm3478_vm3, %v4903_v62, 0.0  ;;  %v3553_v5 = vmul.f32 %v4903_v62, %v4903_v62  ;;  %v3663_v6 = vadd.f32 %v4903_v62, %v5812_v53  ;;  %v3584_v10 = vsel %vm3478_vm3, %v3552_v3, 0.0 }
 0x1ce   : > { %3697 = vst.msk [vmem:[%s5817_s9 + $0x18] sm:$0xff] %vm3478_vm3, %v3665_v0  ;;  %v3481_v8 = vadd.f32 %v3480_v4, %v3479_v2  ;;  %v3589_v21 = vsel %vm3478_vm3, %v3555_v7, 0.0 }
 0x1cf   : > { %v3585_v11 = vsel %vm3478_vm3, %v3553_v5, 0.0  ;;  %3695 = vst.msk [vmem:[%s5817_s9 + $0x8] sm:$0xff] %vm3478_vm3, %v3663_v6  ;;  %v4872_v12 = vpop.f32.mrb[4].mxu0 }
 0x1d0   : > { %v3483_v13 = vadd.f32 %v3482_v9, %v3481_v8  ;;  %v3586_v14 = vadd.f32 %v3585_v11, %v3584_v10  ;;  %v4904_v15 = vadd.f32 %v4872_v12, %v4702_v40  ;;  %v3334_v16 = vpop.f32.mrb[5].mxu0 }
 0x1d1   : > { %v4905_v18 = vadd.f32 %v3334_v16, %v1519_v41  ;;  %v4873_v19 = vpop.f32.mrb[6].mxu0 }
 0x1d2   : > { %v3588_v22 = vadd.f32 %v3587_v17, %v3586_v14  ;;  %v3668_v23 = vadd.f32 %v4904_v15, %v5812_v53  ;;  %v3337_v24 = vpop.f32.mrb[7].mxu0  ;;  %v3485_v25 = vadd.f32 %v3484_v20, %v3483_v13  ;;  %v4906_v30 = vadd.f32 %v4873_v19, %v4703_v42 }
 0x1d3   : > { %v3486_v26 = vsel %vm3478_vm3, %v4905_v18, 0.0  ;;  %v3556_v27 = vmul.f32 %v4905_v18, %v4905_v18  ;;  %v3666_v28 = vadd.f32 %v4905_v18, %v5812_v53  ;;  %v4907_v31 = vadd.f32 %v3337_v24, %v1522_v43 }
 0x1d4   : > { %3700 = vst.msk [vmem:[%s5817_s9 + $0x30] sm:$0xff] %vm3478_vm3, %v3668_v23  ;;  %v3590_v29 = vadd.f32 %v3589_v21, %v3588_v22  ;;  %v3487_v32 = vadd.f32 %v3486_v26, %v3485_v25  ;;  %v3558_v33 = vmul.f32 %v4904_v15, %v4904_v15  ;;  %v3669_v35 = vadd.f32 %v4906_v30, %v5812_v53 }
 0x1d5   : > { %v3591_v1 = vsel %vm3478_vm3, %v3556_v27, 0.0  ;;  %3698 = vst.msk [vmem:[%s5817_s9 + $0x20] sm:$0xff] %vm3478_vm3, %v3666_v28  ;;  %v3488_v36 = vsel %vm3478_vm3, %v4907_v31, 0.0  ;;  %v3557_v37 = vmul.f32 %v4907_v31, %v4907_v31  ;;  %v3667_v38 = vadd.f32 %v4907_v31, %v5812_v53 }
 0x1d6   : > { %v3592_v34 = vadd.f32 %v3591_v1, %v3590_v29  ;;  %3701 = vst.msk [vmem:[%s5817_s9 + $0x38] sm:$0xff] %vm3478_vm3, %v3669_v35  ;;  %v3489_v40 = vadd.f32 %v3488_v36, %v3487_v32  ;;  %v3490_v43 = vsel %vm3478_vm3, %v4904_v15, 0.0  ;;  %v3559_v52 = vmul.f32 %v4906_v30, %v4906_v30 }
 0x1d7   : > { %v4876_v39 = vpop.f32.mrb[8].mxu0  ;;  %v3593_v54 = vsel %vm3478_vm3, %v3557_v37, 0.0  ;;  %3699 = vst.msk [vmem:[%s5817_s9 + $0x28] sm:$0xff] %vm3478_vm3, %v3667_v38  ;;  %v3595_v57 = vsel %vm3478_vm3, %v3558_v33, 0.0  ;;  %v3492_v58 = vsel %vm3478_vm3, %v4906_v30, 0.0 }
 0x1d8   : > { %v4908_v41 = vadd.f32 %v4876_v39, %v5792_v44  ;;  %v3350_v42 = vpop.f32.mrb[9].mxu0  ;;  %v3491_v59 = vadd.f32 %v3490_v43, %v3489_v40  ;;  %v3594_v60 = vadd.f32 %v3593_v54, %v3592_v34  ;;  %v3597_v4 = vsel %vm3478_vm3, %v3559_v52, 0.0 }
 0x1d9   : > { %v4909_v55 = vadd.f32 %v3350_v42, %v5794_v45  ;;  %v4877_v56 = vpop.f32.mrb[10].mxu0 }
 0x1da   : > { %v3353_v44 = vpop.f32.mrb[11].mxu0  ;;  %v3672_v3 = vadd.f32 %v4908_v41, %v5812_v53  ;;  %v3596_v0 = vadd.f32 %v3595_v57, %v3594_v60  ;;  %v3493_v2 = vadd.f32 %v3492_v58, %v3491_v59  ;;  %v4910_v45 = vadd.f32 %v4877_v56, %v5796_v46 }
 0x1db   : > { %v3494_v61 = vsel %vm3478_vm3, %v4909_v55, 0.0  ;;  %v3560_v62 = vmul.f32 %v4909_v55, %v4909_v55  ;;  %v3670_v63 = vadd.f32 %v4909_v55, %v5812_v53  ;;  %v4911_v6 = vadd.f32 %v3353_v44, %v5798_v47 }
 0x1dc   : > { %3704 = vst.msk [vmem:[%s5817_s9 + $0x50] sm:$0xff] %vm3478_vm3, %v3672_v3  ;;  %v3562_v7 = vmul.f32 %v4908_v41, %v4908_v41  ;;  %v3495_v8 = vadd.f32 %v3494_v61, %v3493_v2  ;;  %v3598_v9 = vadd.f32 %v3597_v4, %v3596_v0  ;;  %v3673_v10 = vadd.f32 %v4910_v45, %v5812_v53 }
 0x1dd   : > { %v3599_v5 = vsel %vm3478_vm3, %v3560_v62, 0.0  ;;  %3702 = vst.msk [vmem:[%s5817_s9 + $0x40] sm:$0xff] %vm3478_vm3, %v3670_v63  ;;  %v3496_v11 = vsel %vm3478_vm3, %v4911_v6, 0.0  ;;  %v3561_v46 = vmul.f32 %v4911_v6, %v4911_v6  ;;  %v3671_v12 = vadd.f32 %v4911_v6, %v5812_v53 }
 0x1de   : > { %v3600_v14 = vadd.f32 %v3599_v5, %v3598_v9  ;;  %v3497_v15 = vadd.f32 %v3496_v11, %v3495_v8  ;;  %v3498_v18 = vsel %vm3478_vm3, %v4908_v41, 0.0  ;;  %v3563_v47 = vmul.f32 %v4910_v45, %v4910_v45  ;;  %3705 = vst.msk [vmem:[%s5817_s9 + $0x58] sm:$0xff] %vm3478_vm3, %v3673_v10 }
 0x1df   : > { %v4880_v13 = vpop.f32.mrb[12].mxu0  ;;  %v3601_v19 = vsel %vm3478_vm3, %v3561_v46, 0.0  ;;  %3703 = vst.msk [vmem:[%s5817_s9 + $0x48] sm:$0xff] %vm3478_vm3, %v3671_v12  ;;  %v3603_v22 = vsel %vm3478_vm3, %v3562_v7, 0.0  ;;  %v3500_v23 = vsel %vm3478_vm3, %v4910_v45, 0.0 }
 0x1e0   : > { %v4912_v16 = vadd.f32 %v4880_v13, %v5800_v48  ;;  %v3366_v17 = vpop.f32.mrb[13].mxu0  ;;  %v3499_v48 = vadd.f32 %v3498_v18, %v3497_v15  ;;  %v3602_v24 = vadd.f32 %v3601_v19, %v3600_v14  ;;  %v3605_v32 = vsel %vm3478_vm3, %v3563_v47, 0.0 }
 0x1e1   : > { %v4913_v20 = vadd.f32 %v3366_v17, %v5802_v49  ;;  %v4881_v21 = vpop.f32.mrb[14].mxu0 }
 0x1e2   : > { %v3369_v25 = vpop.f32.mrb[15].mxu0  ;;  %v3676_v26 = vadd.f32 %v4912_v16, %v5812_v53  ;;  %v3604_v30 = vadd.f32 %v3603_v22, %v3602_v24  ;;  %v3501_v31 = vadd.f32 %v3500_v23, %v3499_v48  ;;  %v4914_v49 = vadd.f32 %v4881_v21, %v5804_v50 }
 0x1e3   : > { %v3502_v27 = vsel %vm3478_vm3, %v4913_v20, 0.0  ;;  %v3564_v28 = vmul.f32 %v4913_v20, %v4913_v20  ;;  %v3674_v29 = vadd.f32 %v4913_v20, %v5812_v53  ;;  %v4915_v33 = vadd.f32 %v3369_v25, %v5806_v51 }
 0x1e4   : > { %3708 = vst.msk [vmem:[%s5817_s9 + $0x70] sm:$0xff] %vm3478_vm3, %v3676_v26  ;;  %v3566_v34 = vmul.f32 %v4912_v16, %v4912_v16  ;;  %v3503_v35 = vadd.f32 %v3502_v27, %v3501_v31  ;;  %v3606_v36 = vadd.f32 %v3605_v32, %v3604_v30  ;;  %v3677_v38 = vadd.f32 %v4914_v49, %v5812_v53 }
 0x1e5   : > { %v3607_v1 = vsel %vm3478_vm3, %v3564_v28, 0.0  ;;  %3706 = vst.msk [vmem:[%s5817_s9 + $0x60] sm:$0xff] %vm3478_vm3, %v3674_v29  ;;  %v3504_v50 = vsel %vm3478_vm3, %v4915_v33, 0.0  ;;  %v3565_v39 = vmul.f32 %v4915_v33, %v4915_v33  ;;  %v3675_v40 = vadd.f32 %v4915_v33, %v5812_v53 }
 0x1e6   : > { %v3608_v43 = vadd.f32 %v3607_v1, %v3606_v36  ;;  %v3505_v52 = vadd.f32 %v3504_v50, %v3503_v35  ;;  %v3506_v56 = vsel %vm3478_vm3, %v4912_v16, 0.0  ;;  %v3567_v57 = vmul.f32 %v4914_v49, %v4914_v49  ;;  %3709 = vst.msk [vmem:[%s5817_s9 + $0x78] sm:$0xff] %vm3478_vm3, %v3677_v38 }
 0x1e7   : > { %v4748_v37 = vpop.f32.mrb[16].mxu1  ;;  %v4884_v41 = vpop.f32.mrb[16].mxu0  ;;  %v3609_v58 = vsel %vm3478_vm3, %v3565_v39, 0.0  ;;  %3707 = vst.msk [vmem:[%s5817_s9 + $0x68] sm:$0xff] %vm3478_vm3, %v3675_v40  ;;  %v3611_v3 = vsel %vm3478_vm3, %v3566_v34, 0.0  ;;  %v3508_v61 = vsel %vm3478_vm3, %v4914_v49, 0.0 }
 0x1e8   : > { %v1930_v42 = vpop.f32.mrb[17].mxu1  ;;  %v4916_v54 = vadd.f32 %v4884_v41, %v4748_v37  ;;  %v3382_v55 = vpop.f32.mrb[17].mxu0  ;;  %v3507_v62 = vadd.f32 %v3506_v56, %v3505_v52  ;;  %v3610_v63 = vadd.f32 %v3609_v58, %v3608_v43  ;;  %v3613_v9 = vsel %vm3478_vm3, %v3567_v57, 0.0 }
 0x1e9   : > { %v4749_v51 = vpop.f32.mrb[18].mxu1  ;;  %v4917_v59 = vadd.f32 %v3382_v55, %v1930_v42  ;;  %v4885_v60 = vpop.f32.mrb[18].mxu0 }
 0x1ea   : > { %v1933_v44 = vpop.f32.mrb[19].mxu1  ;;  %v3385_v0 = vpop.f32.mrb[19].mxu0  ;;  %v3680_v2 = vadd.f32 %v4916_v54, %v5812_v53  ;;  %v3612_v6 = vadd.f32 %v3611_v3, %v3610_v63  ;;  %v3509_v7 = vadd.f32 %v3508_v61, %v3507_v62  ;;  %v4918_v8 = vadd.f32 %v4885_v60, %v4749_v51 }
 0x1eb   : > { %v3510_v45 = vsel %vm3478_vm3, %v4917_v59, 0.0  ;;  %v3568_v4 = vmul.f32 %v4917_v59, %v4917_v59  ;;  %v3678_v5 = vadd.f32 %v4917_v59, %v5812_v53  ;;  %v4919_v11 = vadd.f32 %v3385_v0, %v1933_v44 }
 0x1ec   : > { %3712 = vst.msk [vmem:[%s5817_s9 + $0x90] sm:$0xff] %vm3478_vm3, %v3680_v2  ;;  %v3570_v46 = vmul.f32 %v4916_v54, %v4916_v54  ;;  %v3511_v12 = vadd.f32 %v3510_v45, %v3509_v7  ;;  %v3614_v13 = vadd.f32 %v3613_v9, %v3612_v6  ;;  %v3681_v15 = vadd.f32 %v4918_v8, %v5812_v53 }
 0x1ed   : > { %v3615_v10 = vsel %vm3478_vm3, %v3568_v4, 0.0  ;;  %3710 = vst.msk [vmem:[%s5817_s9 + $0x80] sm:$0xff] %vm3478_vm3, %v3678_v5  ;;  %v3512_v16 = vsel %vm3478_vm3, %v4919_v11, 0.0  ;;  %v3569_v17 = vmul.f32 %v4919_v11, %v4919_v11  ;;  %v3679_v18 = vadd.f32 %v4919_v11, %v5812_v53 }
 0x1ee   : > { %v3616_v20 = vadd.f32 %v3615_v10, %v3614_v13  ;;  %v3513_v21 = vadd.f32 %v3512_v16, %v3511_v12  ;;  %v3514_v24 = vsel %vm3478_vm3, %v4916_v54, 0.0  ;;  %v3571_v25 = vmul.f32 %v4918_v8, %v4918_v8  ;;  %3713 = vst.msk [vmem:[%s5817_s9 + $0x98] sm:$0xff] %vm3478_vm3, %v3681_v15 }
 0x1ef   : > { %v4752_v14 = vpop.f32.mrb[20].mxu1  ;;  %v4888_v47 = vpop.f32.mrb[20].mxu0  ;;  %v3617_v26 = vsel %vm3478_vm3, %v3569_v17, 0.0  ;;  %3711 = vst.msk [vmem:[%s5817_s9 + $0x88] sm:$0xff] %vm3478_vm3, %v3679_v18  ;;  %v3619_v30 = vsel %vm3478_vm3, %v3570_v46, 0.0  ;;  %v3516_v31 = vsel %vm3478_vm3, %v4918_v8, 0.0 }
 0x1f0   : > { %v1946_v19 = vpop.f32.mrb[21].mxu1  ;;  %v4920_v22 = vadd.f32 %v4888_v47, %v4752_v14  ;;  %v3398_v23 = vpop.f32.mrb[21].mxu0  ;;  %v3515_v49 = vadd.f32 %v3514_v24, %v3513_v21  ;;  %v3618_v32 = vadd.f32 %v3617_v26, %v3616_v20  ;;  %v3621_v39 = vsel %vm3478_vm3, %v3571_v25, 0.0 }
 0x1f1   : > { %v4753_v48 = vpop.f32.mrb[22].mxu1  ;;  %v4921_v27 = vadd.f32 %v3398_v23, %v1946_v19  ;;  %v4889_v28 = vpop.f32.mrb[22].mxu0 }
 0x1f2   : > { %v1949_v29 = vpop.f32.mrb[23].mxu1  ;;  %v3401_v1 = vpop.f32.mrb[23].mxu0  ;;  %v3684_v33 = vadd.f32 %v4920_v22, %v5812_v53  ;;  %v3620_v37 = vadd.f32 %v3619_v30, %v3618_v32  ;;  %v3517_v38 = vadd.f32 %v3516_v31, %v3515_v49  ;;  %v4922_v50 = vadd.f32 %v4889_v28, %v4753_v48 }
 0x1f3   : > { %v3518_v34 = vsel %vm3478_vm3, %v4921_v27, 0.0  ;;  %v3572_v35 = vmul.f32 %v4921_v27, %v4921_v27  ;;  %v3682_v36 = vadd.f32 %v4921_v27, %v5812_v53  ;;  %v4923_v41 = vadd.f32 %v3401_v1, %v1949_v29 }
 0x1f4   : > { %3716 = vst.msk [vmem:[%s5817_s9 + $0xb0] sm:$0xff] %vm3478_vm3, %v3684_v33  ;;  %v3574_v42 = vmul.f32 %v4920_v22, %v4920_v22  ;;  %v3519_v43 = vadd.f32 %v3518_v34, %v3517_v38  ;;  %v3622_v52 = vadd.f32 %v3621_v39, %v3620_v37  ;;  %v3685_v55 = vadd.f32 %v4922_v50, %v5812_v53 }
 0x1f5   : > { %v3623_v40 = vsel %vm3478_vm3, %v3572_v35, 0.0  ;;  %3714 = vst.msk [vmem:[%s5817_s9 + $0xa0] sm:$0xff] %vm3478_vm3, %v3682_v36  ;;  %v3520_v51 = vsel %vm3478_vm3, %v4923_v41, 0.0  ;;  %v3573_v56 = vmul.f32 %v4923_v41, %v4923_v41  ;;  %v3683_v57 = vadd.f32 %v4923_v41, %v5812_v53 }
 0x1f6   : > { %v3624_v60 = vadd.f32 %v3623_v40, %v3622_v52  ;;  %v3521_v44 = vadd.f32 %v3520_v51, %v3519_v43  ;;  %v3522_v63 = vsel %vm3478_vm3, %v4920_v22, 0.0  ;;  %v3575_v0 = vmul.f32 %v4922_v50, %v4922_v50  ;;  %3717 = vst.msk [vmem:[%s5817_s9 + $0xb8] sm:$0xff] %vm3478_vm3, %v3685_v55 }
 0x1f7   : > { %v4756_v54 = vpop.f32.mrb[24].mxu1  ;;  %v4892_v58 = vpop.f32.mrb[24].mxu0  ;;  %v3625_v2 = vsel %vm3478_vm3, %v3573_v56, 0.0  ;;  %3715 = vst.msk [vmem:[%s5817_s9 + $0xa8] sm:$0xff] %vm3478_vm3, %v3683_v57  ;;  %v3627_v6 = vsel %vm3478_vm3, %v3574_v42, 0.0  ;;  %v3524_v7 = vsel %vm3478_vm3, %v4922_v50, 0.0 }
 0x1f8   : > { %v1962_v59 = vpop.f32.mrb[25].mxu1  ;;  %v4924_v3 = vadd.f32 %v4892_v58, %v4756_v54  ;;  %v3414_v61 = vpop.f32.mrb[25].mxu0  ;;  %v3523_v8 = vadd.f32 %v3522_v63, %v3521_v44  ;;  %v3626_v9 = vadd.f32 %v3625_v2, %v3624_v60  ;;  %v3629_v17 = vsel %vm3478_vm3, %v3575_v0, 0.0 }
 0x1f9   : > { %v4757_v62 = vpop.f32.mrb[26].mxu1  ;;  %v4925_v45 = vadd.f32 %v3414_v61, %v1962_v59  ;;  %v4893_v4 = vpop.f32.mrb[26].mxu0 }
 0x1fa   : > { %v1965_v5 = vpop.f32.mrb[27].mxu1  ;;  %v3417_v10 = vpop.f32.mrb[27].mxu0  ;;  %v3688_v11 = vadd.f32 %v4924_v3, %v5812_v53  ;;  %v3628_v14 = vadd.f32 %v3627_v6, %v3626_v9  ;;  %v3525_v15 = vadd.f32 %v3524_v7, %v3523_v8  ;;  %v4926_v16 = vadd.f32 %v4893_v4, %v4757_v62 }
 0x1fb   : > { %v3526_v46 = vsel %vm3478_vm3, %v4925_v45, 0.0  ;;  %v3576_v12 = vmul.f32 %v4925_v45, %v4925_v45  ;;  %v3686_v13 = vadd.f32 %v4925_v45, %v5812_v53  ;;  %v4927_v47 = vadd.f32 %v3417_v10, %v1965_v5 }
 0x1fc   : > { %3720 = vst.msk [vmem:[%s5817_s9 + $0xd0] sm:$0xff] %vm3478_vm3, %v3688_v11  ;;  %v3578_v19 = vmul.f32 %v4924_v3, %v4924_v3  ;;  %v3527_v20 = vadd.f32 %v3526_v46, %v3525_v15  ;;  %v3630_v21 = vadd.f32 %v3629_v17, %v3628_v14  ;;  %v3689_v23 = vadd.f32 %v4926_v16, %v5812_v53 }
 0x1fd   : > { %v3631_v18 = vsel %vm3478_vm3, %v3576_v12, 0.0  ;;  %3718 = vst.msk [vmem:[%s5817_s9 + $0xc0] sm:$0xff] %vm3478_vm3, %v3686_v13  ;;  %v3528_v48 = vsel %vm3478_vm3, %v4927_v47, 0.0  ;;  %v3577_v24 = vmul.f32 %v4927_v47, %v4927_v47  ;;  %v3687_v25 = vadd.f32 %v4927_v47, %v5812_v53 }
 0x1fe   : > { %v3632_v28 = vadd.f32 %v3631_v18, %v3630_v21  ;;  %v3529_v29 = vadd.f32 %v3528_v48, %v3527_v20  ;;  %v3530_v32 = vsel %vm3478_vm3, %v4924_v3, 0.0  ;;  %v3579_v1 = vmul.f32 %v4926_v16, %v4926_v16  ;;  %3721 = vst.msk [vmem:[%s5817_s9 + $0xd8] sm:$0xff] %vm3478_vm3, %v3689_v23  ;;  %v3477_v20 = vld [vmem:[%s5780_s25] sm:$0x1] }
 0x1ff   : > { %v4760_v22 = vpop.f32.mrb[28].mxu1  ;;  %v4896_v26 = vpop.f32.mrb[28].mxu0  ;;  %v3633_v33 = vsel %vm3478_vm3, %v3577_v24, 0.0  ;;  %3719 = vst.msk [vmem:[%s5817_s9 + $0xc8] sm:$0xff] %vm3478_vm3, %v3687_v25  ;;  %v3635_v37 = vsel %vm3478_vm3, %v3578_v19, 0.0  ;;  %v3532_v38 = vsel %vm3478_vm3, %v4926_v16, 0.0 }
 0x200   : > { %v1978_v27 = vpop.f32.mrb[29].mxu1  ;;  %v4928_v30 = vadd.f32 %v4896_v26, %v4760_v22  ;;  %v3430_v31 = vpop.f32.mrb[29].mxu0  ;;  %v3531_v50 = vadd.f32 %v3530_v32, %v3529_v29  ;;  %v3634_v39 = vadd.f32 %v3633_v33, %v3632_v28  ;;  %v3637_v56 = vsel %vm3478_vm3, %v3579_v1, 0.0  ;;  %v3551_v23 = vld [vmem:[%s5786_s28] sm:$0x1] }
 0x201   : > { %v4761_v49 = vpop.f32.mrb[30].mxu1  ;;  %v4929_v34 = vadd.f32 %v3430_v31, %v1978_v27  ;;  %v4897_v35 = vpop.f32.mrb[30].mxu0 }
 0x202   : > { %v1981_v36 = vpop.f32.mrb[31].mxu1  ;;  %v3433_v40 = vpop.f32.mrb[31].mxu0  ;;  %v3692_v41 = vadd.f32 %v4928_v30, %v5812_v53  ;;  %v3636_v54 = vadd.f32 %v3635_v37, %v3634_v39  ;;  %v3533_v55 = vadd.f32 %v3532_v38, %v3531_v50  ;;  %v4930_v51 = vadd.f32 %v4897_v35, %v4761_v49 }
 0x203   : > { %v3534_v42 = vsel %vm3478_vm3, %v4929_v34, 0.0  ;;  %v3580_v43 = vmul.f32 %v4929_v34, %v4929_v34  ;;  %v3690_v52 = vadd.f32 %v4929_v34, %v5812_v53  ;;  %v4931_v58 = vadd.f32 %v3433_v40, %v1981_v36 }
 0x204   : > { %3724 = vst.msk [vmem:[%s5817_s9 + $0xf0] sm:$0xff] %vm3478_vm3, %v3692_v41  ;;  %v3582_v59 = vmul.f32 %v4928_v30, %v4928_v30  ;;  %v3535_v60 = vadd.f32 %v3534_v42, %v3533_v55  ;;  %v3638_v44 = vadd.f32 %v3637_v56, %v3636_v54  ;;  %v3583_v3 = vmul.f32 %v4930_v51, %v4930_v51 }
 0x205   : > { %v3639_v57 = vsel %vm3478_vm3, %v3580_v43, 0.0  ;;  %3722 = vst.msk [vmem:[%s5817_s9 + $0xe0] sm:$0xff] %vm3478_vm3, %v3690_v52  ;;  %v3693_v61 = vadd.f32 %v4930_v51, %v5812_v53  ;;  %v3536_v62 = vsel %vm3478_vm3, %v4931_v58, 0.0  ;;  %v3581_v63 = vmul.f32 %v4931_v58, %v4931_v58 }
 0x206   : > { %v3691_v0 = vadd.f32 %v4931_v58, %v5812_v53  ;;  %v3640_v2 = vadd.f32 %v3639_v57, %v3638_v44  ;;  %v3645_v45 = vsel %vm3478_vm3, %v3583_v3, 0.0  ;;  %v3537_v4 = vadd.f32 %v3536_v62, %v3535_v60 }
 0x207   : > { %v3538_v5 = vsel %vm3478_vm3, %v4928_v30, 0.0  ;;  %3725 = vst.msk [vmem:[%s5817_s9 + $0xf8] sm:$0xff] %vm3478_vm3, %v3693_v61  ;;  %v3641_v6 = vsel %vm3478_vm3, %v3581_v63, 0.0  ;;  %v3643_v9 = vsel %vm3478_vm3, %v3582_v59, 0.0  ;;  %v3540_v10 = vsel %vm3478_vm3, %v4930_v51, 0.0 }
 0x208   : > { %3723 = vst.msk [vmem:[%s5817_s9 + $0xe8] sm:$0xff] %vm3478_vm3, %v3691_v0  ;;  %v3539_v7 = vadd.f32 %v3538_v5, %v3537_v4  ;;  %v3642_v8 = vadd.f32 %v3641_v6, %v3640_v2 }
 0x20a   : > { %v3541_v53 = vadd.f32 %v3540_v10, %v3539_v7  ;;  %v3644_v11 = vadd.f32 %v3643_v9, %v3642_v8 }
 0x20c   : > { %v3542_v46 = vrot.slane %v3541_v53, 4  ;;  %v3646_v12 = vadd.f32 %v3645_v45, %v3644_v11 }
 0x20e   : > { %v3543_v13 = vadd.f32 %v3542_v46, %v3541_v53  ;;  %v3647_v14 = vrot.slane %v3646_v12, 4 }
 0x210   : > { %v3544_v15 = vrot.slane %v3543_v13, 2  ;;  %v3648_v16 = vadd.f32 %v3647_v14, %v3646_v12 }
 0x212   : > { %v3545_v17 = vadd.f32 %v3544_v15, %v3543_v13  ;;  %v3649_v18 = vrot.slane %v3648_v16, 2 }
 0x214   : > { %v3546_v47 = vrot.slane %v3545_v17, 1  ;;  %v3650_v19 = vadd.f32 %v3649_v18, %v3648_v16 }
 0x216   : > { %v3547_v21 = vadd.f32 %v3546_v47, %v3545_v17  ;;  %v3651_v22 = vrot.slane %v3650_v19, 1 }
 0x218   : > { %v3548_v48 = vadd.f32 %v3547_v21, %v3477_v20  ;;  %v3652_v24 = vadd.f32 %v3651_v22, %v3650_v19 }
 0x21a   : > { %3550 = vst.msk [vmem:[%s5780_s25] sm:$0x1] %vm270_vm2, %v3548_v48  ;;  %v3653_v25 = vadd.f32 %v3652_v24, %v3551_v23 }
 0x21c   : > { %3654 = vst.msk [vmem:[%s5786_s28] sm:$0x1] %vm270_vm2, %v3653_v25 }
 0x21d PF: > { %s16_s20 = sadd.s32 1, %s5358_s20   ;;  %s6008_s18 = smov %s5354_s19 }
 0x21e   : > { %p13_p5 = scmp.ge.s32.totalorder %s16_s20, 4   ;;  %s6009_s19 = smov %s6011_s21 }
 0x220   :  { %15 = sbr.rel (!%p13_p5) target bundleno = 2 (0x2), region = 107 }

</bundles_post_ra>
